<compile_context>
chip_gen: v7x
topology: tpu7x:2x2x1
jax: 0.10.0
libtpu: 0.0.40
codegen_flags: <defaults>
</compile_context>

<pallas_src>
import jax
import jax.numpy as jnp
from jax.experimental import pallas as pl
from jax.experimental.pallas import tpu as pltpu

LATENT_DIM = 20
IN_DIM = 784          # natural lane width (== full array dim in BlockSpecs)
HID_DIM = 400
HID_PAD = 512         # 4 * 128
LAT_PAD = 128         # mu occupies [0:128), logvar occupies [128:256) of heads


def _round_up(x, m):
    return (x + m - 1) // m * m


def _cdiv(a, b):
    return -(-a // b)


def _choose_tiling(B):
    """Batch tile (multiple of 16 for bf16), padding < one tile, >=2 grid
    steps when B permits so v7x's two TensorCores both get work."""
    TB_MAX = 512
    SUB = 16
    nsteps = max(1, _cdiv(B, TB_MAX))
    if nsteps == 1 and B >= 2 * SUB:
        nsteps = 2
    TB = _round_up(_cdiv(B, nsteps), SUB)
    nsteps = _cdiv(B, TB)
    B_pad = nsteps * TB
    return TB, B_pad


def vae_kernel(x_ref, eps_ref,
               w1_ref, b1_ref,
               wh_ref, bh_ref,
               wd1_ref, bd1_ref,
               wd2_ref, bd2_ref,
               xrec_ref, heads_ref):
    # ---- encoder: Linear(784,400) + ReLU (hidden padded to 512 lanes) ----
    x = x_ref[...]                                             # (TB, 784) bf16
    h = jnp.dot(x, w1_ref[...],
                preferred_element_type=jnp.float32) + b1_ref[...]
    h = jnp.maximum(h, 0.0).astype(jnp.bfloat16)               # fused relu+cast

    # ---- fused mu/logvar heads: single (512, 256) matmul ----
    heads = jnp.dot(h, wh_ref[...],
                    preferred_element_type=jnp.float32) + bh_ref[...]
    mu = heads[:, :LAT_PAD]                                    # (TB, 128) f32
    logvar = heads[:, LAT_PAD:]                                # (TB, 128) f32

    # ---- reparameterize: z = mu + eps * exp(0.5*logvar)  (f32 VPU/EUP) ----
    # Padded latent cols [20:128): mu=logvar=0 -> std=1, eps=0 -> z=0, and
    # wd1 rows [20:128) are zero-padded, so they contribute nothing.  Keep
    # that zero-padding of wd1 if refactoring.
    std = jnp.exp(0.5 * logvar)
    z = (mu + eps_ref[...] * std).astype(jnp.bfloat16)         # (TB, 128) bf16

    # ---- decoder: Linear(20,400)+ReLU, Linear(400,784)+Sigmoid ----
    d = jnp.dot(z, wd1_ref[...],
                preferred_element_type=jnp.float32) + bd1_ref[...]
    d = jnp.maximum(d, 0.0).astype(jnp.bfloat16)               # (TB, 512) bf16
    logits = jnp.dot(d, wd2_ref[...],
                     preferred_element_type=jnp.float32) + bd2_ref[...]
    xrec_ref[...] = jax.nn.sigmoid(logits)                     # (TB, 784) f32
    heads_ref[...] = heads                                     # (TB, 256) f32


def pack_params(p):
    """Pad hidden/latent dims to lane-dense shapes, fuse mu/logvar heads,
    cast weights to bf16.  The 784 input/output dims are kept natural."""
    f32, bf16 = jnp.float32, jnp.bfloat16

    w1 = jnp.zeros((IN_DIM, HID_PAD), f32).at[:, :HID_DIM].set(p["w1"])
    b1 = jnp.zeros((1, HID_PAD), f32).at[0, :HID_DIM].set(p["b1"])

    wh = jnp.zeros((HID_PAD, 2 * LAT_PAD), f32)
    wh = wh.at[:HID_DIM, :LATENT_DIM].set(p["wmu"])
    wh = wh.at[:HID_DIM, LAT_PAD:LAT_PAD + LATENT_DIM].set(p["wlv"])
    bh = jnp.zeros((1, 2 * LAT_PAD), f32)
    bh = bh.at[0, :LATENT_DIM].set(p["bmu"])
    bh = bh.at[0, LAT_PAD:LAT_PAD + LATENT_DIM].set(p["blv"])

    wd1 = jnp.zeros((LAT_PAD, HID_PAD), f32).at[:LATENT_DIM, :HID_DIM].set(p["wd1"])
    bd1 = jnp.zeros((1, HID_PAD), f32).at[0, :HID_DIM].set(p["bd1"])
    wd2 = jnp.zeros((HID_PAD, IN_DIM), f32).at[:HID_DIM, :].set(p["wd2"])
    bd2 = p["bd2"].reshape(1, IN_DIM).astype(f32)

    return {
        "w1": w1.astype(bf16), "b1": b1,
        "wh": wh.astype(bf16), "bh": bh,
        "wd1": wd1.astype(bf16), "bd1": bd1,
        "wd2": wd2.astype(bf16), "bd2": bd2,
    }


@jax.jit
def vae_forward(x_nchw, eps, pk):
    """x_nchw: (B,1,28,28) f32, eps: (B, LATENT_DIM) f32, pk: packed params."""
    B = x_nchw.shape[0]
    TB, B_pad = _choose_tiling(B)

    # Single-pass reshape + bf16 cast; pad only the batch dim if needed.
    x_in = x_nchw.reshape(B, IN_DIM).astype(jnp.bfloat16)
    if B_pad != B:
        x_in = jnp.pad(x_in, ((0, B_pad - B), (0, 0)))
    # eps lane-padded to 128 (tiny: 20 f32 per row).
    eps_pad = jnp.zeros((B_pad, LAT_PAD), jnp.float32).at[:B, :LATENT_DIM].set(eps)

    grid = (B_pad // TB,)

    # activations: tiled over batch; weights/biases: constant block index so
    # Mosaic keeps them resident in VMEM across grid steps (no re-DMA).
    act = lambda shape: pl.BlockSpec(shape, lambda i: (i, 0))
    res = lambda shape: pl.BlockSpec(shape, lambda i: (0, 0))

    in_specs = [
        act((TB, IN_DIM)),                 # x (bf16)
        act((TB, LAT_PAD)),                # eps (f32)
        res((IN_DIM, HID_PAD)),            # w1
        res((1, HID_PAD)),                 # b1
        res((HID_PAD, 2 * LAT_PAD)),       # w_heads (mu | logvar)
        res((1, 2 * LAT_PAD)),             # b_heads
        res((LAT_PAD, HID_PAD)),           # wd1
        res((1, HID_PAD)),                 # bd1
        res((HID_PAD, IN_DIM)),            # wd2
        res((1, IN_DIM)),                  # bd2
    ]
    out_specs = (
        act((TB, IN_DIM)),                 # x_recon, natural 784-lane width
        act((TB, 2 * LAT_PAD)),            # heads = [mu | logvar]
    )
    out_shapes = (
        jax.ShapeDtypeStruct((B_pad, IN_DIM), jnp.float32),
        jax.ShapeDtypeStruct((B_pad, 2 * LAT_PAD), jnp.float32),
    )

    xrec, heads = pl.pallas_call(
        vae_kernel,
        grid=grid,
        out_shape=out_shapes,
        in_specs=in_specs,
        out_specs=out_specs,
        compiler_params=pltpu.CompilerParams(
            dimension_semantics=("parallel",),
            vmem_limit_bytes=32 * 1024 * 1024,
        ),
    )(
        x_in, eps_pad,
        pk["w1"], pk["b1"], pk["wh"], pk["bh"],
        pk["wd1"], pk["bd1"], pk["wd2"], pk["bd2"],
    )

    x_recon = xrec[:B].reshape(B, 1, 28, 28)
    mu = heads[:B, :LATENT_DIM]
    logvar = heads[:B, LAT_PAD:LAT_PAD + LATENT_DIM]
    return x_recon, mu, logvar


def init_params(key):
    """Deterministic init mimicking nn.Linear; weights stored (in, out), f32."""
    def linear(key, fan_in, fan_out):
        kw, kb = jax.random.split(key)
        bound = 1.0 / jnp.sqrt(fan_in)
        w = jax.random.uniform(kw, (fan_in, fan_out), jnp.float32, -bound, bound)
        b = jax.random.uniform(kb, (fan_out,), jnp.float32, -bound, bound)
        return w, b

    k1, k2, k3, k4, k5 = jax.random.split(key, 5)
    w1, b1 = linear(k1, IN_DIM, HID_DIM)
    wmu, bmu = linear(k2, HID_DIM, LATENT_DIM)
    wlv, blv = linear(k3, HID_DIM, LATENT_DIM)
    wd1, bd1 = linear(k4, LATENT_DIM, HID_DIM)
    wd2, bd2 = linear(k5, HID_DIM, IN_DIM)
    return {
        "w1": w1, "b1": b1, "wmu": wmu, "bmu": bmu, "wlv": wlv, "blv": blv,
        "wd1": wd1, "bd1": bd1, "wd2": wd2, "bd2": bd2,
    }


def ref_forward(x, eps, p):
    """Pure-JAX reference with the same bf16-operand / f32-accum matmuls."""
    bf = jnp.bfloat16
    B = x.shape[0]
    xf = x.reshape(B, IN_DIM)
    dot = lambda a, w: jnp.dot(a.astype(bf), w.astype(bf),
                               preferred_element_type=jnp.float32)
    h = jnp.maximum(dot(xf, p["w1"]) + p["b1"], 0.0)
    mu = dot(h, p["wmu"]) + p["bmu"]
    lv = dot(h, p["wlv"]) + p["blv"]
    z = mu + eps * jnp.exp(0.5 * lv)
    d = jnp.maximum(dot(z, p["wd1"]) + p["bd1"], 0.0)
    xr = jax.nn.sigmoid(dot(d, p["wd2"]) + p["bd2"]).reshape(B, 1, 28, 28)
    return xr, mu, lv


if __name__ == "__main__":
    key = jax.random.PRNGKey(0)
    kp, kx, ke = jax.random.split(key, 3)

    params = init_params(kp)
    packed = pack_params(params)

    B = 8
    x = jax.random.normal(kx, (B, 1, 28, 28), jnp.float32)
    # TODO(synk): eps stands in for torch.randn_like(std) (passed explicitly
    # to keep the kernel deterministic and testable).
    eps = jax.random.normal(ke, (B, LATENT_DIM), jnp.float32)

    x_recon, mu, logvar = jax.block_until_ready(vae_forward(x, eps, packed))

    xr_ref, mu_ref, lv_ref = ref_forward(x, eps, params)

    assert x_recon.shape == (B, 1, 28, 28)
    assert mu.shape == (B, LATENT_DIM) and logvar.shape == (B, LATENT_DIM)
    assert jnp.allclose(x_recon, xr_ref, atol=2e-2)
    assert jnp.allclose(mu, mu_ref, atol=2e-2)
    assert jnp.allclose(logvar, lv_ref, atol=2e-2)

    print("KERNEL_OK")
</pallas_src>

<mosaic_0001>
module attributes {stable_mosaic.version = 11 : i64} {
  func.func @vae_kernel(%arg0: i32, %arg1: memref<16x784xbf16, #tpu.memory_space<vmem>>, %arg2: memref<16x128xf32, #tpu.memory_space<vmem>>, %arg3: memref<784x512xbf16, #tpu.memory_space<vmem>>, %arg4: memref<1x512xf32, #tpu.memory_space<vmem>>, %arg5: memref<512x256xbf16, #tpu.memory_space<vmem>>, %arg6: memref<1x256xf32, #tpu.memory_space<vmem>>, %arg7: memref<128x512xbf16, #tpu.memory_space<vmem>>, %arg8: memref<1x512xf32, #tpu.memory_space<vmem>>, %arg9: memref<512x784xbf16, #tpu.memory_space<vmem>>, %arg10: memref<1x784xf32, #tpu.memory_space<vmem>>, %arg11: memref<16x784xf32, #tpu.memory_space<vmem>>, %arg12: memref<16x256xf32, #tpu.memory_space<vmem>>) attributes {dimension_semantics = [#tpu.dimension_semantics<parallel>], iteration_bounds = array<i64: 1>, scalar_prefetch = 0 : i64, scratch_operands = 0 : i64, tpu.core_type = #tpu.core_type<tc>, window_params = [{transform_indices = @transform_0, window_bounds = array<i64: 16, 784>}, {transform_indices = @transform_1, window_bounds = array<i64: 16, 128>}, {pipeline_mode = #tpu.pipeline_mode<synchronous>, transform_indices = @transform_2, window_bounds = array<i64: 784, 512>}, {pipeline_mode = #tpu.pipeline_mode<synchronous>, transform_indices = @transform_3, window_bounds = array<i64: 1, 512>}, {pipeline_mode = #tpu.pipeline_mode<synchronous>, transform_indices = @transform_4, window_bounds = array<i64: 512, 256>}, {pipeline_mode = #tpu.pipeline_mode<synchronous>, transform_indices = @transform_5, window_bounds = array<i64: 1, 256>}, {pipeline_mode = #tpu.pipeline_mode<synchronous>, transform_indices = @transform_6, window_bounds = array<i64: 128, 512>}, {pipeline_mode = #tpu.pipeline_mode<synchronous>, transform_indices = @transform_7, window_bounds = array<i64: 1, 512>}, {pipeline_mode = #tpu.pipeline_mode<synchronous>, transform_indices = @transform_8, window_bounds = array<i64: 512, 784>}, {pipeline_mode = #tpu.pipeline_mode<synchronous>, transform_indices = @transform_9, window_bounds = array<i64: 1, 784>}, {transform_indices = @transform_10, window_bounds = array<i64: 16, 784>}, {transform_indices = @transform_11, window_bounds = array<i64: 16, 256>}]} {
    %c0 = arith.constant 0 : index
    %c0_0 = arith.constant 0 : index
    %0 = vector.load %arg1[%c0, %c0_0] : memref<16x784xbf16, #tpu.memory_space<vmem>>, vector<16x784xbf16>
    %c0_1 = arith.constant 0 : index
    %c0_2 = arith.constant 0 : index
    %1 = vector.load %arg3[%c0_1, %c0_2] : memref<784x512xbf16, #tpu.memory_space<vmem>>, vector<784x512xbf16>
    %cst = arith.constant dense<0.000000e+00> : vector<16x512xf32>
    %2 = tpu.matmul %0, %1, %cst {dimension_numbers = #tpu.dot_dimension_numbers<[1], [0], [0], [1], [0, 0, 1, 1], [], []>} : vector<16x784xbf16>, vector<784x512xbf16>, vector<16x512xf32> -> vector<16x512xf32>
    %c0_3 = arith.constant 0 : index
    %c0_4 = arith.constant 0 : index
    %3 = vector.load %arg4[%c0_3, %c0_4] : memref<1x512xf32, #tpu.memory_space<vmem>>, vector<1x512xf32>
    %4 = vector.broadcast %3 : vector<1x512xf32> to vector<16x512xf32>
    %5 = arith.addf %2, %4 : vector<16x512xf32>
    %cst_5 = arith.constant 0.000000e+00 : f32
    %6 = vector.broadcast %cst_5 : f32 to vector<16x512xf32>
    %7 = arith.maximumf %5, %6 : vector<16x512xf32>
    %8 = arith.truncf %7 : vector<16x512xf32> to vector<16x512xbf16>
    %c0_6 = arith.constant 0 : index
    %c0_7 = arith.constant 0 : index
    %9 = vector.load %arg5[%c0_6, %c0_7] : memref<512x256xbf16, #tpu.memory_space<vmem>>, vector<512x256xbf16>
    %cst_8 = arith.constant dense<0.000000e+00> : vector<16x256xf32>
    %10 = tpu.matmul %8, %9, %cst_8 {dimension_numbers = #tpu.dot_dimension_numbers<[1], [0], [0], [1], [0, 0, 1, 1], [], []>} : vector<16x512xbf16>, vector<512x256xbf16>, vector<16x256xf32> -> vector<16x256xf32>
    %c0_9 = arith.constant 0 : index
    %c0_10 = arith.constant 0 : index
    %11 = vector.load %arg6[%c0_9, %c0_10] : memref<1x256xf32, #tpu.memory_space<vmem>>, vector<1x256xf32>
    %12 = vector.broadcast %11 : vector<1x256xf32> to vector<16x256xf32>
    %13 = arith.addf %10, %12 : vector<16x256xf32>
    %14 = vector.extract_strided_slice %13 {offsets = [0, 0], sizes = [16, 128], strides = [1, 1]} : vector<16x256xf32> to vector<16x128xf32>
    %15 = vector.extract_strided_slice %13 {offsets = [0, 128], sizes = [16, 128], strides = [1, 1]} : vector<16x256xf32> to vector<16x128xf32>
    %cst_11 = arith.constant 5.000000e-01 : f32
    %16 = vector.broadcast %cst_11 : f32 to vector<16x128xf32>
    %17 = arith.mulf %16, %15 : vector<16x128xf32>
    %18 = math.exp %17 : vector<16x128xf32>
    %c0_12 = arith.constant 0 : index
    %c0_13 = arith.constant 0 : index
    %19 = vector.load %arg2[%c0_12, %c0_13] : memref<16x128xf32, #tpu.memory_space<vmem>>, vector<16x128xf32>
    %20 = arith.mulf %19, %18 : vector<16x128xf32>
    %21 = arith.addf %14, %20 : vector<16x128xf32>
    %22 = arith.truncf %21 : vector<16x128xf32> to vector<16x128xbf16>
    %c0_14 = arith.constant 0 : index
    %c0_15 = arith.constant 0 : index
    %23 = vector.load %arg7[%c0_14, %c0_15] : memref<128x512xbf16, #tpu.memory_space<vmem>>, vector<128x512xbf16>
    %cst_16 = arith.constant dense<0.000000e+00> : vector<16x512xf32>
    %24 = tpu.matmul %22, %23, %cst_16 {dimension_numbers = #tpu.dot_dimension_numbers<[1], [0], [0], [1], [0, 0, 1, 1], [], []>} : vector<16x128xbf16>, vector<128x512xbf16>, vector<16x512xf32> -> vector<16x512xf32>
    %c0_17 = arith.constant 0 : index
    %c0_18 = arith.constant 0 : index
    %25 = vector.load %arg8[%c0_17, %c0_18] : memref<1x512xf32, #tpu.memory_space<vmem>>, vector<1x512xf32>
    %26 = vector.broadcast %25 : vector<1x512xf32> to vector<16x512xf32>
    %27 = arith.addf %24, %26 : vector<16x512xf32>
    %cst_19 = arith.constant 0.000000e+00 : f32
    %28 = vector.broadcast %cst_19 : f32 to vector<16x512xf32>
    %29 = arith.maximumf %27, %28 : vector<16x512xf32>
    %30 = arith.truncf %29 : vector<16x512xf32> to vector<16x512xbf16>
    %c0_20 = arith.constant 0 : index
    %c0_21 = arith.constant 0 : index
    %31 = vector.load %arg9[%c0_20, %c0_21] : memref<512x784xbf16, #tpu.memory_space<vmem>>, vector<512x784xbf16>
    %cst_22 = arith.constant dense<0.000000e+00> : vector<16x784xf32>
    %32 = tpu.matmul %30, %31, %cst_22 {dimension_numbers = #tpu.dot_dimension_numbers<[1], [0], [0], [1], [0, 0, 1, 1], [], []>} : vector<16x512xbf16>, vector<512x784xbf16>, vector<16x784xf32> -> vector<16x784xf32>
    %c0_23 = arith.constant 0 : index
    %c0_24 = arith.constant 0 : index
    %33 = vector.load %arg10[%c0_23, %c0_24] : memref<1x784xf32, #tpu.memory_space<vmem>>, vector<1x784xf32>
    %34 = vector.broadcast %33 : vector<1x784xf32> to vector<16x784xf32>
    %35 = arith.addf %32, %34 : vector<16x784xf32>
    %36 = arith.negf %35 : vector<16x784xf32>
    %37 = math.exp %36 : vector<16x784xf32>
    %cst_25 = arith.constant 1.000000e+00 : f32
    %38 = vector.broadcast %cst_25 : f32 to vector<16x784xf32>
    %39 = arith.addf %38, %37 : vector<16x784xf32>
    %40 = arith.divf %38, %39 : vector<16x784xf32>
    %c0_26 = arith.constant 0 : index
    %c0_27 = arith.constant 0 : index
    %41 = vector.load %arg11[%c0_26, %c0_27] : memref<16x784xf32, #tpu.memory_space<vmem>>, vector<16x784xf32>
    tpu.vector_store %arg11[%c0_26, %c0_27], %40 {strides = array<i32>} : memref<16x784xf32, #tpu.memory_space<vmem>>, vector<16x784xf32>,
    %c0_28 = arith.constant 0 : index
    %c0_29 = arith.constant 0 : index
    %42 = vector.load %arg12[%c0_28, %c0_29] : memref<16x256xf32, #tpu.memory_space<vmem>>, vector<16x256xf32>
    tpu.vector_store %arg12[%c0_28, %c0_29], %13 {strides = array<i32>} : memref<16x256xf32, #tpu.memory_space<vmem>>, vector<16x256xf32>,
    return
  }
  func.func @transform_0(%arg0: i32) -> (i32, i32) {
    %c0_i32 = arith.constant 0 : i32
    %c0_i32_0 = arith.constant 0 : i32
    return %arg0, %c0_i32 : i32, i32
  }
  func.func @transform_1(%arg0: i32) -> (i32, i32) {
    %c0_i32 = arith.constant 0 : i32
    %c0_i32_0 = arith.constant 0 : i32
    return %arg0, %c0_i32 : i32, i32
  }
  func.func @transform_2(%arg0: i32) -> (i32, i32) {
    %c0_i32 = arith.constant 0 : i32
    %c0_i32_0 = arith.constant 0 : i32
    %c0_i32_1 = arith.constant 0 : i32
    return %c0_i32, %c0_i32_0 : i32, i32
  }
  func.func @transform_3(%arg0: i32) -> (i32, i32) {
    %c0_i32 = arith.constant 0 : i32
    %c0_i32_0 = arith.constant 0 : i32
    %c0_i32_1 = arith.constant 0 : i32
    return %c0_i32, %c0_i32_0 : i32, i32
  }
  func.func @transform_4(%arg0: i32) -> (i32, i32) {
    %c0_i32 = arith.constant 0 : i32
    %c0_i32_0 = arith.constant 0 : i32
    %c0_i32_1 = arith.constant 0 : i32
    return %c0_i32, %c0_i32_0 : i32, i32
  }
  func.func @transform_5(%arg0: i32) -> (i32, i32) {
    %c0_i32 = arith.constant 0 : i32
    %c0_i32_0 = arith.constant 0 : i32
    %c0_i32_1 = arith.constant 0 : i32
    return %c0_i32, %c0_i32_0 : i32, i32
  }
  func.func @transform_6(%arg0: i32) -> (i32, i32) {
    %c0_i32 = arith.constant 0 : i32
    %c0_i32_0 = arith.constant 0 : i32
    %c0_i32_1 = arith.constant 0 : i32
    return %c0_i32, %c0_i32_0 : i32, i32
  }
  func.func @transform_7(%arg0: i32) -> (i32, i32) {
    %c0_i32 = arith.constant 0 : i32
    %c0_i32_0 = arith.constant 0 : i32
    %c0_i32_1 = arith.constant 0 : i32
    return %c0_i32, %c0_i32_0 : i32, i32
  }
  func.func @transform_8(%arg0: i32) -> (i32, i32) {
    %c0_i32 = arith.constant 0 : i32
    %c0_i32_0 = arith.constant 0 : i32
    %c0_i32_1 = arith.constant 0 : i32
    return %c0_i32, %c0_i32_0 : i32, i32
  }
  func.func @transform_9(%arg0: i32) -> (i32, i32) {
    %c0_i32 = arith.constant 0 : i32
    %c0_i32_0 = arith.constant 0 : i32
    %c0_i32_1 = arith.constant 0 : i32
    return %c0_i32, %c0_i32_0 : i32, i32
  }
  func.func @transform_10(%arg0: i32) -> (i32, i32) {
    %c0_i32 = arith.constant 0 : i32
    %c0_i32_0 = arith.constant 0 : i32
    return %arg0, %c0_i32 : i32, i32
  }
  func.func @transform_11(%arg0: i32) -> (i32, i32) {
    %c0_i32 = arith.constant 0 : i32
    %c0_i32_0 = arith.constant 0 : i32
    return %arg0, %c0_i32 : i32, i32
  }
}

</mosaic_0001>

<bundles_post_ra>
// kernel: vae_forward.1
= control target key start
LH: loop header
LB: loop body
LE: loop exit
PB: predicated region body
PF: predicated region fallthrough
CT: control target
= control target key end

     0   :  { %vm1279_vm0 = vcmask 130048   ;;  %s7600_s2 = inlined_call_operand.vmem [shape: bf16[784,512], index: 2, kind: input, shape index: {}]   ;;  %s7601_s0 = inlined_call_operand.vmem [shape: bf16[16,784], index: 0, kind: input, shape index: {}]   ;;  %s7602_s4 = inlined_call_operand.vmem [shape: bf16[512,256], index: 4, kind: input, shape index: {}]   ;;  %s7603_s6 = inlined_call_operand.vmem [shape: bf16[128,512], index: 6, kind: input, shape index: {}]   ;;  %s7604_s3 = inlined_call_operand.vmem [shape: f32[1,512], index: 3, kind: input, shape index: {}]   ;;  %s7605_s8 = inlined_call_operand.vmem [shape: bf16[512,784], index: 8, kind: input, shape index: {}]   ;;  %s7606_s5 = inlined_call_operand.vmem [shape: f32[1,256], index: 5, kind: input, shape index: {}]   ;;  %s7607_s11 = inlined_call_operand.vmem [shape: f32[16,256], index: 11, kind: output, shape index: {1}]   ;;  %s7608_s1 = inlined_call_operand.vmem [shape: f32[16,128], index: 1, kind: input, shape index: {}]   ;;  %s7609_s7 = inlined_call_operand.vmem [shape: f32[1,512], index: 7, kind: input, shape index: {}]   ;;  %s7610_s9 = inlined_call_operand.vmem [shape: f32[1,784], index: 9, kind: input, shape index: {}]   ;;  %s7611_s10 = inlined_call_operand.vmem [shape: f32[16,784], index: 10, kind: output, shape index: {0}]  }
   0x1   :  { %v4989_v0 = vld [vmem:[%s7600_s2 + $0x4] ss:$16 sps:$4 sm:$0xff]   ;;  %v4991_v1 = vld [vmem:[%s7600_s2 + $0xc] ss:$16 sps:$4 sm:$0xff]   ;;  %v4993_v2 = vld [vmem:[%s7600_s2] ss:$16 sps:$4 sm:$0xff]  }
   0x2   :  { %1283 = vmatprep.subr.bf16.mxu0 %v4989_v0  ;;  %v4994_v3 = vld [vmem:[%s7600_s2 + $0x8] ss:$16 sps:$4 sm:$0xff]   ;;  %1455 = vmatprep.subr.bf16.mxu1 %v4991_v1  ;;  %v4995_v4 = vld [vmem:[%s7600_s2 + $0x24] ss:$16 sps:$4 sm:$0xff]   ;;  %v4997_v5 = vld [vmem:[%s7600_s2 + $0x2c] ss:$16 sps:$4 sm:$0xff]  }
   0x3   :  { %1284 = vmatpush1.bf16.msra.mxu0 %v4993_v2  ;;  %1456 = vmatpush1.bf16.msra.mxu1 %v4994_v3  ;;  %v4999_v6 = vld [vmem:[%s7600_s2 + $0x20] ss:$16 sps:$4 sm:$0xff]   ;;  %v5000_v7 = vld [vmem:[%s7600_s2 + $0x28] ss:$16 sps:$4 sm:$0xff]   ;;  %v5001_v8 = vld [vmem:[%s7600_s2 + $0x44] ss:$16 sps:$4 sm:$0xff]  }
   0x4   :  { %1285 = vmatprep.subr.bf16.mxu0 %v4995_v4  ;;  %1457 = vmatprep.subr.bf16.mxu1 %v4997_v5  ;;  %v5003_v9 = vld [vmem:[%s7600_s2 + $0x4c] ss:$16 sps:$4 sm:$0xff]   ;;  %v5005_v10 = vld [vmem:[%s7600_s2 + $0x40] ss:$16 sps:$4 sm:$0xff]   ;;  %v5006_v11 = vld [vmem:[%s7600_s2 + $0x48] ss:$16 sps:$4 sm:$0xff]  }
   0x5   :  { %v5007_v12 = vld [vmem:[%s7600_s2 + $0x64] ss:$16 sps:$4 sm:$0xff]   ;;  %v5009_v13 = vld [vmem:[%s7600_s2 + $0x6c] ss:$16 sps:$4 sm:$0xff]   ;;  %v5011_v14 = vld [vmem:[%s7600_s2 + $0x60] ss:$16 sps:$4 sm:$0xff]  }
   0x6   :  { %v5012_v15 = vld [vmem:[%s7600_s2 + $0x68] ss:$16 sps:$4 sm:$0xff]   ;;  %v5013_v16 = vld [vmem:[%s7600_s2 + $0x84] ss:$16 sps:$4 sm:$0xff]   ;;  %v5015_v17 = vld [vmem:[%s7600_s2 + $0x8c] ss:$16 sps:$4 sm:$0xff]  }
   0x7   :  { %1286 = vmatpush1.bf16.msra.mxu0 %v4999_v6  ;;  %1458 = vmatpush1.bf16.msra.mxu1 %v5000_v7  ;;  %v5017_v18 = vld [vmem:[%s7600_s2 + $0x80] ss:$16 sps:$4 sm:$0xff]   ;;  %v5018_v19 = vld [vmem:[%s7600_s2 + $0x88] ss:$16 sps:$4 sm:$0xff]   ;;  %v5019_v20 = vld [vmem:[%s7600_s2 + $0xa4] ss:$16 sps:$4 sm:$0xff]  }
   0x8   :  { %1287 = vmatprep.subr.bf16.mxu0 %v5001_v8  ;;  %1459 = vmatprep.subr.bf16.mxu1 %v5003_v9  ;;  %v5021_v21 = vld [vmem:[%s7600_s2 + $0xac] ss:$16 sps:$4 sm:$0xff]   ;;  %v5023_v22 = vld [vmem:[%s7600_s2 + $0xa0] ss:$16 sps:$4 sm:$0xff]   ;;  %v5024_v23 = vld [vmem:[%s7600_s2 + $0xa8] ss:$16 sps:$4 sm:$0xff]  }
   0x9   :  { %v5025_v24 = vld [vmem:[%s7600_s2 + $0xc4] ss:$16 sps:$4 sm:$0xff]   ;;  %v5027_v25 = vld [vmem:[%s7600_s2 + $0xcc] ss:$16 sps:$4 sm:$0xff]   ;;  %v5029_v26 = vld [vmem:[%s7600_s2 + $0xc0] ss:$16 sps:$4 sm:$0xff]  }
   0xa   :  { %v5030_v27 = vld [vmem:[%s7600_s2 + $0xc8] ss:$16 sps:$4 sm:$0xff]   ;;  %v5031_v28 = vld [vmem:[%s7600_s2 + $0xe4] ss:$16 sps:$4 sm:$0xff]   ;;  %v5033_v29 = vld [vmem:[%s7600_s2 + $0xec] ss:$16 sps:$4 sm:$0xff]  }
   0xb   :  { %1288 = vmatpush1.bf16.msra.mxu0 %v5005_v10  ;;  %1460 = vmatpush1.bf16.msra.mxu1 %v5006_v11  ;;  %v5035_v30 = vld [vmem:[%s7600_s2 + $0xe0] ss:$16 sps:$4 sm:$0xff]   ;;  %v5036_v31 = vld [vmem:[%s7600_s2 + $0xe8] ss:$16 sps:$4 sm:$0xff]   ;;  %v5037_v32 = vld [vmem:[%s7600_s2 + $0x104] ss:$16 sps:$4 sm:$0xff]  }
   0xc   :  { %1289 = vmatprep.subr.bf16.mxu0 %v5007_v12  ;;  %1461 = vmatprep.subr.bf16.mxu1 %v5009_v13  ;;  %v5039_v33 = vld [vmem:[%s7600_s2 + $0x10c] ss:$16 sps:$4 sm:$0xff]   ;;  %v5041_v34 = vld [vmem:[%s7600_s2 + $0x100] ss:$16 sps:$4 sm:$0xff]   ;;  %v5042_v35 = vld [vmem:[%s7600_s2 + $0x108] ss:$16 sps:$4 sm:$0xff]  }
   0xd   :  { %v5043_v36 = vld [vmem:[%s7600_s2 + $0x124] ss:$16 sps:$4 sm:$0xff]   ;;  %v5045_v37 = vld [vmem:[%s7600_s2 + $0x12c] ss:$16 sps:$4 sm:$0xff]   ;;  %v5047_v38 = vld [vmem:[%s7600_s2 + $0x120] ss:$16 sps:$4 sm:$0xff]  }
   0xe   :  { %v5048_v39 = vld [vmem:[%s7600_s2 + $0x128] ss:$16 sps:$4 sm:$0xff]   ;;  %v5049_v40 = vld [vmem:[%s7600_s2 + $0x144] ss:$16 sps:$4 sm:$0xff]   ;;  %v5051_v41 = vld [vmem:[%s7600_s2 + $0x14c] ss:$16 sps:$4 sm:$0xff]  }
   0xf   :  { %1290 = vmatpush1.bf16.msra.mxu0 %v5011_v14  ;;  %1462 = vmatpush1.bf16.msra.mxu1 %v5012_v15  ;;  %v5053_v42 = vld [vmem:[%s7600_s2 + $0x140] ss:$16 sps:$4 sm:$0xff]   ;;  %v5054_v43 = vld [vmem:[%s7600_s2 + $0x148] ss:$16 sps:$4 sm:$0xff]   ;;  %v5055_v44 = vld [vmem:[%s7600_s2 + $0x164] ss:$16 sps:$4 sm:$0xff]  }
  0x10   :  { %1291 = vmatprep.subr.bf16.mxu0 %v5013_v16  ;;  %1463 = vmatprep.subr.bf16.mxu1 %v5015_v17  ;;  %v5057_v45 = vld [vmem:[%s7600_s2 + $0x16c] ss:$16 sps:$4 sm:$0xff]   ;;  %v5059_v46 = vld [vmem:[%s7600_s2 + $0x160] ss:$16 sps:$4 sm:$0xff]   ;;  %v5060_v47 = vld [vmem:[%s7600_s2 + $0x168] ss:$16 sps:$4 sm:$0xff]  }
  0x11   :  { %v5087_v48 = vld [vmem:[%s7601_s0 + $0x4] ss:$28 sps:$4 sm:$0xff]   ;;  %v5063_v50 = vld [vmem:[%s7600_s2 + $0x18c] ss:$16 sps:$4 sm:$0xff]   ;;  %v5066_v52 = vld [vmem:[%s7600_s2 + $0x188] ss:$16 sps:$4 sm:$0xff]  }
  0x12   :  { %v5061_v49 = vld [vmem:[%s7600_s2 + $0x184] ss:$16 sps:$4 sm:$0xff]   ;;  %1315 = vmatprep.mubr.bf16.mxu0 %v5087_v48  ;;  %1487 = vmatprep.mubr.bf16.mxu1 %v5087_v48  ;;  %v5065_v51 = vld [vmem:[%s7600_s2 + $0x180] ss:$16 sps:$4 sm:$0xff]   ;;  %v5069_v54 = vld [vmem:[%s7600_s2 + $0x1ac] ss:$16 sps:$4 sm:$0xff]  }
  0x13   :  { %1292 = vmatpush1.bf16.msra.mxu0 %v5017_v18  ;;  %1464 = vmatpush1.bf16.msra.mxu1 %v5018_v19  ;;  %v5067_v53 = vld [vmem:[%s7600_s2 + $0x1a4] ss:$16 sps:$4 sm:$0xff]   ;;  %v5071_v55 = vld [vmem:[%s7600_s2 + $0x1a0] ss:$16 sps:$4 sm:$0xff]   ;;  %v5072_v56 = vld [vmem:[%s7600_s2 + $0x1a8] ss:$16 sps:$4 sm:$0xff]  }
  0x14   :  { %1293 = vmatprep.subr.bf16.mxu0 %v5019_v20  ;;  %1465 = vmatprep.subr.bf16.mxu1 %v5021_v21  ;;  %v5073_v57 = vld [vmem:[%s7600_s2 + $0x1c4] ss:$16 sps:$4 sm:$0xff]   ;;  %v5075_v58 = vld [vmem:[%s7600_s2 + $0x1cc] ss:$16 sps:$4 sm:$0xff]   ;;  %v5077_v59 = vld [vmem:[%s7600_s2 + $0x1c0] ss:$16 sps:$4 sm:$0xff]  }
  0x15   :  { %v5078_v60 = vld [vmem:[%s7600_s2 + $0x1c8] ss:$16 sps:$4 sm:$0xff]   ;;  %v5079_v61 = vld [vmem:[%s7600_s2 + $0x1e4] ss:$16 sps:$4 sm:$0xff]   ;;  %v5081_v62 = vld [vmem:[%s7600_s2 + $0x1ec] ss:$16 sps:$4 sm:$0xff]  }
  0x16   :  { %v5083_v63 = vld [vmem:[%s7600_s2 + $0x1e0] ss:$16 sps:$4 sm:$0xff]   ;;  %v5084_v0 = vld [vmem:[%s7600_s2 + $0x1e8] ss:$16 sps:$4 sm:$0xff]   ;;  %v5090_v1 = vld [vmem:[%s7600_s2 + $0x204] ss:$16 sps:$4 sm:$0xff]  }
  0x17   :  { %1294 = vmatpush1.bf16.msra.mxu0 %v5023_v22  ;;  %1466 = vmatpush1.bf16.msra.mxu1 %v5024_v23  ;;  %v5093_v2 = vld [vmem:[%s7600_s2 + $0x20c] ss:$16 sps:$4 sm:$0xff]   ;;  %v5088_v4 = vld [vmem:[%s7600_s2 + $0x200] ss:$16 sps:$4 sm:$0xff]   ;;  %v5091_v5 = vld [vmem:[%s7600_s2 + $0x208] ss:$16 sps:$4 sm:$0xff]  }
  0x18   :  { %1295 = vmatprep.subr.bf16.mxu0 %v5025_v24  ;;  %1467 = vmatprep.subr.bf16.mxu1 %v5027_v25  ;;  %v5085_v3 = vld [vmem:[%s7601_s0] ss:$28 sps:$4 sm:$0xff]   ;;  %v5096_v6 = vld [vmem:[%s7600_s2 + $0x224] ss:$16 sps:$4 sm:$0xff]   ;;  %v5097_v9 = vld [vmem:[%s7600_s2 + $0x228] ss:$16 sps:$4 sm:$0xff]  }
  0x19   :  { %v5099_v7 = vld [vmem:[%s7600_s2 + $0x22c] ss:$16 sps:$4 sm:$0xff]   ;;  %v5094_v8 = vld [vmem:[%s7600_s2 + $0x220] ss:$16 sps:$4 sm:$0xff]   ;;  %v5102_v10 = vld [vmem:[%s7600_s2 + $0x244] ss:$16 sps:$4 sm:$0xff]  }
  0x1a   :  { %v5105_v11 = vld [vmem:[%s7600_s2 + $0x24c] ss:$16 sps:$4 sm:$0xff]   ;;  %v5100_v12 = vld [vmem:[%s7600_s2 + $0x240] ss:$16 sps:$4 sm:$0xff]   ;;  %v5103_v13 = vld [vmem:[%s7600_s2 + $0x248] ss:$16 sps:$4 sm:$0xff]  }
  0x1b   :  { %1296 = vmatpush1.bf16.msra.mxu0 %v5029_v26  ;;  %1468 = vmatpush1.bf16.msra.mxu1 %v5030_v27  ;;  %v5108_v14 = vld [vmem:[%s7600_s2 + $0x264] ss:$16 sps:$4 sm:$0xff]   ;;  %v5111_v15 = vld [vmem:[%s7600_s2 + $0x26c] ss:$16 sps:$4 sm:$0xff]   ;;  %v5106_v16 = vld [vmem:[%s7600_s2 + $0x260] ss:$16 sps:$4 sm:$0xff]  }
  0x1c   :  { %1297 = vmatprep.subr.bf16.mxu0 %v5031_v28  ;;  %1469 = vmatprep.subr.bf16.mxu1 %v5033_v29  ;;  %v5109_v17 = vld [vmem:[%s7600_s2 + $0x268] ss:$16 sps:$4 sm:$0xff]   ;;  %v5114_v18 = vld [vmem:[%s7600_s2 + $0x284] ss:$16 sps:$4 sm:$0xff]   ;;  %v5117_v19 = vld [vmem:[%s7600_s2 + $0x28c] ss:$16 sps:$4 sm:$0xff]  }
  0x1d   :  { %v5112_v20 = vld [vmem:[%s7600_s2 + $0x280] ss:$16 sps:$4 sm:$0xff]   ;;  %v5115_v21 = vld [vmem:[%s7600_s2 + $0x288] ss:$16 sps:$4 sm:$0xff]   ;;  %v5120_v22 = vld [vmem:[%s7600_s2 + $0x2a4] ss:$16 sps:$4 sm:$0xff]  }
  0x1e   :  { %v5123_v23 = vld [vmem:[%s7600_s2 + $0x2ac] ss:$16 sps:$4 sm:$0xff]   ;;  %v5118_v24 = vld [vmem:[%s7600_s2 + $0x2a0] ss:$16 sps:$4 sm:$0xff]   ;;  %v5121_v25 = vld [vmem:[%s7600_s2 + $0x2a8] ss:$16 sps:$4 sm:$0xff]  }
  0x1f   :  { %1298 = vmatpush1.bf16.msra.mxu0 %v5035_v30  ;;  %1470 = vmatpush1.bf16.msra.mxu1 %v5036_v31  ;;  %v5126_v26 = vld [vmem:[%s7600_s2 + $0x2c4] ss:$16 sps:$4 sm:$0xff]   ;;  %v5129_v27 = vld [vmem:[%s7600_s2 + $0x2cc] ss:$16 sps:$4 sm:$0xff]   ;;  %v5124_v28 = vld [vmem:[%s7600_s2 + $0x2c0] ss:$16 sps:$4 sm:$0xff]  }
  0x20   :  { %1299 = vmatprep.subr.bf16.mxu0 %v5037_v32  ;;  %1471 = vmatprep.subr.bf16.mxu1 %v5039_v33  ;;  %v5127_v29 = vld [vmem:[%s7600_s2 + $0x2c8] ss:$16 sps:$4 sm:$0xff]   ;;  %v5132_v31 = vld [vmem:[%s7600_s2 + $0x2e4] ss:$16 sps:$4 sm:$0xff]   ;;  %v5135_v32 = vld [vmem:[%s7600_s2 + $0x2ec] ss:$16 sps:$4 sm:$0xff]  }
  0x21   :  { %v5186_v30 = vld [vmem:[%s7601_s0 + $0xc] ss:$28 sps:$4 sm:$0xff]   ;;  %v5130_v33 = vld [vmem:[%s7600_s2 + $0x2e0] ss:$16 sps:$4 sm:$0xff]  }
  0x22   :  { %v5159_v48 = vld [vmem:[%s7600_s2 + $0x36c] ss:$16 sps:$4 sm:$0xff]  }
  0x23   :  { %1300 = vmatpush1.bf16.msra.mxu0 %v5041_v34  ;;  %1472 = vmatpush1.bf16.msra.mxu1 %v5042_v35  ;;  %v5133_v34 = vld [vmem:[%s7600_s2 + $0x2e8] ss:$16 sps:$4 sm:$0xff]   ;;  %v5138_v35 = vld [vmem:[%s7600_s2 + $0x304] ss:$16 sps:$4 sm:$0xff]  }
  0x24   :  { %1301 = vmatprep.subr.bf16.mxu0 %v5043_v36  ;;  %1473 = vmatprep.subr.bf16.mxu1 %v5045_v37  ;;  %v5141_v36 = vld [vmem:[%s7600_s2 + $0x30c] ss:$16 sps:$4 sm:$0xff]   ;;  %v5136_v37 = vld [vmem:[%s7600_s2 + $0x300] ss:$16 sps:$4 sm:$0xff]  }
  0x27   :  { %1302 = vmatpush1.bf16.msra.mxu0 %v5047_v38  ;;  %1474 = vmatpush1.bf16.msra.mxu1 %v5048_v39  ;;  %v5139_v38 = vld [vmem:[%s7600_s2 + $0x308] ss:$16 sps:$4 sm:$0xff]   ;;  %v5144_v39 = vld [vmem:[%s7600_s2 + $0x324] ss:$16 sps:$4 sm:$0xff]  }
  0x28   :  { %1303 = vmatprep.subr.bf16.mxu0 %v5049_v40  ;;  %1475 = vmatprep.subr.bf16.mxu1 %v5051_v41  ;;  %v5147_v40 = vld [vmem:[%s7600_s2 + $0x32c] ss:$16 sps:$4 sm:$0xff]   ;;  %v5142_v41 = vld [vmem:[%s7600_s2 + $0x320] ss:$16 sps:$4 sm:$0xff]  }
  0x2b   :  { %1304 = vmatpush1.bf16.msra.mxu0 %v5053_v42  ;;  %1476 = vmatpush1.bf16.msra.mxu1 %v5054_v43  ;;  %v5145_v42 = vld [vmem:[%s7600_s2 + $0x328] ss:$16 sps:$4 sm:$0xff]   ;;  %v5150_v43 = vld [vmem:[%s7600_s2 + $0x344] ss:$16 sps:$4 sm:$0xff]  }
  0x2c   :  { %1305 = vmatprep.subr.bf16.mxu0 %v5055_v44  ;;  %1477 = vmatprep.subr.bf16.mxu1 %v5057_v45  ;;  %v5153_v44 = vld [vmem:[%s7600_s2 + $0x34c] ss:$16 sps:$4 sm:$0xff]   ;;  %v5148_v45 = vld [vmem:[%s7600_s2 + $0x340] ss:$16 sps:$4 sm:$0xff]  }
  0x2f   :  { %1306 = vmatpush1.bf16.msra.mxu0 %v5059_v46  ;;  %1478 = vmatpush1.bf16.msra.mxu1 %v5060_v47  ;;  %v5151_v46 = vld [vmem:[%s7600_s2 + $0x348] ss:$16 sps:$4 sm:$0xff]   ;;  %v5156_v47 = vld [vmem:[%s7600_s2 + $0x364] ss:$16 sps:$4 sm:$0xff]  }
  0x30   :  { %1307 = vmatprep.subr.bf16.mxu0 %v5061_v49  ;;  %1479 = vmatprep.subr.bf16.mxu1 %v5063_v50  ;;  %v5154_v49 = vld [vmem:[%s7600_s2 + $0x360] ss:$16 sps:$4 sm:$0xff]   ;;  %v5157_v50 = vld [vmem:[%s7600_s2 + $0x368] ss:$16 sps:$4 sm:$0xff]  }
  0x33   :  { %1308 = vmatpush1.bf16.msra.mxu0 %v5065_v51  ;;  %1480 = vmatpush1.bf16.msra.mxu1 %v5066_v52  ;;  %v5162_v51 = vld [vmem:[%s7600_s2 + $0x384] ss:$16 sps:$4 sm:$0xff]   ;;  %v5165_v52 = vld [vmem:[%s7600_s2 + $0x38c] ss:$16 sps:$4 sm:$0xff]  }
  0x34   :  { %1309 = vmatprep.subr.bf16.mxu0 %v5067_v53  ;;  %1481 = vmatprep.subr.bf16.mxu1 %v5069_v54  ;;  %v5160_v53 = vld [vmem:[%s7600_s2 + $0x380] ss:$16 sps:$4 sm:$0xff]   ;;  %v5163_v54 = vld [vmem:[%s7600_s2 + $0x388] ss:$16 sps:$4 sm:$0xff]  }
  0x37   :  { %1310 = vmatpush1.bf16.msra.mxu0 %v5071_v55  ;;  %1482 = vmatpush1.bf16.msra.mxu1 %v5072_v56  ;;  %v5168_v55 = vld [vmem:[%s7600_s2 + $0x3a4] ss:$16 sps:$4 sm:$0xff]   ;;  %v5171_v56 = vld [vmem:[%s7600_s2 + $0x3ac] ss:$16 sps:$4 sm:$0xff]  }
  0x38   :  { %1311 = vmatprep.subr.bf16.mxu0 %v5073_v57  ;;  %1483 = vmatprep.subr.bf16.mxu1 %v5075_v58  ;;  %v5166_v57 = vld [vmem:[%s7600_s2 + $0x3a0] ss:$16 sps:$4 sm:$0xff]   ;;  %v5169_v58 = vld [vmem:[%s7600_s2 + $0x3a8] ss:$16 sps:$4 sm:$0xff]  }
  0x3b   :  { %1312 = vmatpush1.bf16.msra.mxu0 %v5077_v59  ;;  %1484 = vmatpush1.bf16.msra.mxu1 %v5078_v60  ;;  %v5174_v59 = vld [vmem:[%s7600_s2 + $0x3c4] ss:$16 sps:$4 sm:$0xff]   ;;  %v5177_v60 = vld [vmem:[%s7600_s2 + $0x3cc] ss:$16 sps:$4 sm:$0xff]  }
  0x3c   :  { %1313 = vmatprep.subr.bf16.mxu0 %v5079_v61  ;;  %1485 = vmatprep.subr.bf16.mxu1 %v5081_v62  ;;  %v5172_v61 = vld [vmem:[%s7600_s2 + $0x3c0] ss:$16 sps:$4 sm:$0xff]   ;;  %v5175_v62 = vld [vmem:[%s7600_s2 + $0x3c8] ss:$16 sps:$4 sm:$0xff]  }
  0x3f   :  { %1314 = vmatpush1.bf16.msra.mxu0 %v5083_v63  ;;  %1486 = vmatpush1.bf16.msra.mxu1 %v5084_v0  ;;  %v5180_v63 = vld [vmem:[%s7600_s2 + $0x3e4] ss:$16 sps:$4 sm:$0xff]   ;;  %v5183_v0 = vld [vmem:[%s7600_s2 + $0x3ec] ss:$16 sps:$4 sm:$0xff]  }
  0x40   :  { %1326 = vmatprep.subr.bf16.mxu0 %v5090_v1  ;;  %1498 = vmatprep.subr.bf16.mxu1 %v5093_v2  ;;  %v5178_v1 = vld [vmem:[%s7600_s2 + $0x3e0] ss:$16 sps:$4 sm:$0xff]   ;;  %v5181_v2 = vld [vmem:[%s7600_s2 + $0x3e8] ss:$16 sps:$4 sm:$0xff]  }
  0x42   :  { %1316 = vmatmul.mubr.bf16.vlgmr.msra.gmra.mrb[0].mxu0 %v5085_v3  ;;  %1488 = vmatmul.mubr.bf16.vlgmr.msra.gmra.mrb[0].mxu1 %v5085_v3  ;;  %v5189_v3 = vld [vmem:[%s7600_s2 + $0x404] ss:$16 sps:$4 sm:$0xff]  }
  0x43   :  { %1327 = vmatpush1.bf16.msra.mxu0 %v5088_v4  ;;  %1499 = vmatpush1.bf16.msra.mxu1 %v5091_v5  ;;  %v5192_v4 = vld [vmem:[%s7600_s2 + $0x40c] ss:$16 sps:$4 sm:$0xff]   ;;  %v5184_v5 = vld [vmem:[%s7601_s0 + $0x8] ss:$28 sps:$4 sm:$0xff]  }
  0x44   :  { %1328 = vmatprep.subr.bf16.mxu0 %v5096_v6  ;;  %1500 = vmatprep.subr.bf16.mxu1 %v5099_v7  ;;  %v5187_v6 = vld [vmem:[%s7600_s2 + $0x400] ss:$16 sps:$4 sm:$0xff]   ;;  %v5190_v7 = vld [vmem:[%s7600_s2 + $0x408] ss:$16 sps:$4 sm:$0xff]  }
  0x45   :  { %1358 = vmatprep.mubr.bf16.mxu0 %v5186_v30  ;;  %1530 = vmatprep.mubr.bf16.mxu1 %v5186_v30  ;;  %v5228_v30 = vld [vmem:[%s7600_s2 + $0x4cc] ss:$16 sps:$4 sm:$0xff]  }
  0x47   :  { %1329 = vmatpush1.bf16.msra.mxu0 %v5094_v8  ;;  %1501 = vmatpush1.bf16.msra.mxu1 %v5097_v9  ;;  %v5195_v8 = vld [vmem:[%s7600_s2 + $0x424] ss:$16 sps:$4 sm:$0xff]   ;;  %v5198_v9 = vld [vmem:[%s7600_s2 + $0x42c] ss:$16 sps:$4 sm:$0xff]  }
  0x48   :  { %1330 = vmatprep.subr.bf16.mxu0 %v5102_v10  ;;  %1502 = vmatprep.subr.bf16.mxu1 %v5105_v11  ;;  %v5193_v10 = vld [vmem:[%s7600_s2 + $0x420] ss:$16 sps:$4 sm:$0xff]   ;;  %v5196_v11 = vld [vmem:[%s7600_s2 + $0x428] ss:$16 sps:$4 sm:$0xff]  }
  0x4b   :  { %1331 = vmatpush1.bf16.msra.mxu0 %v5100_v12  ;;  %1503 = vmatpush1.bf16.msra.mxu1 %v5103_v13  ;;  %v5285_v12 = vld [vmem:[%s7601_s0 + $0x14] ss:$28 sps:$4 sm:$0xff]  }
  0x4c   :  { %1332 = vmatprep.subr.bf16.mxu0 %v5108_v14  ;;  %1504 = vmatprep.subr.bf16.mxu1 %v5111_v15  ;;  %v5201_v13 = vld [vmem:[%s7600_s2 + $0x444] ss:$16 sps:$4 sm:$0xff]   ;;  %v5204_v14 = vld [vmem:[%s7600_s2 + $0x44c] ss:$16 sps:$4 sm:$0xff]   ;;  %v5199_v15 = vld [vmem:[%s7600_s2 + $0x440] ss:$16 sps:$4 sm:$0xff]  }
  0x4f   :  { %1333 = vmatpush1.bf16.msra.mxu0 %v5106_v16  ;;  %1505 = vmatpush1.bf16.msra.mxu1 %v5109_v17  ;;  %v5202_v16 = vld [vmem:[%s7600_s2 + $0x448] ss:$16 sps:$4 sm:$0xff]   ;;  %v5207_v17 = vld [vmem:[%s7600_s2 + $0x464] ss:$16 sps:$4 sm:$0xff]  }
  0x50   :  { %1334 = vmatprep.subr.bf16.mxu0 %v5114_v18  ;;  %1506 = vmatprep.subr.bf16.mxu1 %v5117_v19  ;;  %v5210_v18 = vld [vmem:[%s7600_s2 + $0x46c] ss:$16 sps:$4 sm:$0xff]   ;;  %v5205_v19 = vld [vmem:[%s7600_s2 + $0x460] ss:$16 sps:$4 sm:$0xff]  }
  0x53   :  { %1335 = vmatpush1.bf16.msra.mxu0 %v5112_v20  ;;  %1507 = vmatpush1.bf16.msra.mxu1 %v5115_v21  ;;  %v5208_v20 = vld [vmem:[%s7600_s2 + $0x468] ss:$16 sps:$4 sm:$0xff]   ;;  %v5213_v21 = vld [vmem:[%s7600_s2 + $0x484] ss:$16 sps:$4 sm:$0xff]  }
  0x54   :  { %1336 = vmatprep.subr.bf16.mxu0 %v5120_v22  ;;  %1508 = vmatprep.subr.bf16.mxu1 %v5123_v23  ;;  %v5216_v22 = vld [vmem:[%s7600_s2 + $0x48c] ss:$16 sps:$4 sm:$0xff]   ;;  %v5211_v23 = vld [vmem:[%s7600_s2 + $0x480] ss:$16 sps:$4 sm:$0xff]  }
  0x57   :  { %1337 = vmatpush1.bf16.msra.mxu0 %v5118_v24  ;;  %1509 = vmatpush1.bf16.msra.mxu1 %v5121_v25  ;;  %v5214_v24 = vld [vmem:[%s7600_s2 + $0x488] ss:$16 sps:$4 sm:$0xff]   ;;  %v5219_v25 = vld [vmem:[%s7600_s2 + $0x4a4] ss:$16 sps:$4 sm:$0xff]  }
  0x58   :  { %1338 = vmatprep.subr.bf16.mxu0 %v5126_v26  ;;  %1510 = vmatprep.subr.bf16.mxu1 %v5129_v27  ;;  %v5222_v26 = vld [vmem:[%s7600_s2 + $0x4ac] ss:$16 sps:$4 sm:$0xff]   ;;  %v5217_v27 = vld [vmem:[%s7600_s2 + $0x4a0] ss:$16 sps:$4 sm:$0xff]  }
  0x5b   :  { %1339 = vmatpush1.bf16.msra.mxu0 %v5124_v28  ;;  %1511 = vmatpush1.bf16.msra.mxu1 %v5127_v29  ;;  %v5220_v28 = vld [vmem:[%s7600_s2 + $0x4a8] ss:$16 sps:$4 sm:$0xff]   ;;  %v5225_v29 = vld [vmem:[%s7600_s2 + $0x4c4] ss:$16 sps:$4 sm:$0xff]  }
  0x5c   :  { %1340 = vmatprep.subr.bf16.mxu0 %v5132_v31  ;;  %1512 = vmatprep.subr.bf16.mxu1 %v5135_v32  ;;  %v5223_v31 = vld [vmem:[%s7600_s2 + $0x4c0] ss:$16 sps:$4 sm:$0xff]   ;;  %v5226_v32 = vld [vmem:[%s7600_s2 + $0x4c8] ss:$16 sps:$4 sm:$0xff]  }
  0x5f   :  { %1341 = vmatpush1.bf16.msra.mxu0 %v5130_v33  ;;  %1513 = vmatpush1.bf16.msra.mxu1 %v5133_v34  ;;  %v5231_v33 = vld [vmem:[%s7600_s2 + $0x4e4] ss:$16 sps:$4 sm:$0xff]   ;;  %v5234_v34 = vld [vmem:[%s7600_s2 + $0x4ec] ss:$16 sps:$4 sm:$0xff]  }
  0x60   :  { %1342 = vmatprep.subr.bf16.mxu0 %v5138_v35  ;;  %1514 = vmatprep.subr.bf16.mxu1 %v5141_v36  ;;  %v5229_v35 = vld [vmem:[%s7600_s2 + $0x4e0] ss:$16 sps:$4 sm:$0xff]   ;;  %v5232_v36 = vld [vmem:[%s7600_s2 + $0x4e8] ss:$16 sps:$4 sm:$0xff]  }
  0x63   :  { %1343 = vmatpush1.bf16.msra.mxu0 %v5136_v37  ;;  %1515 = vmatpush1.bf16.msra.mxu1 %v5139_v38  ;;  %v5237_v37 = vld [vmem:[%s7600_s2 + $0x504] ss:$16 sps:$4 sm:$0xff]   ;;  %v5240_v38 = vld [vmem:[%s7600_s2 + $0x50c] ss:$16 sps:$4 sm:$0xff]  }
  0x64   :  { %1344 = vmatprep.subr.bf16.mxu0 %v5144_v39  ;;  %1516 = vmatprep.subr.bf16.mxu1 %v5147_v40  ;;  %v5235_v39 = vld [vmem:[%s7600_s2 + $0x500] ss:$16 sps:$4 sm:$0xff]   ;;  %v5238_v40 = vld [vmem:[%s7600_s2 + $0x508] ss:$16 sps:$4 sm:$0xff]  }
  0x67   :  { %1345 = vmatpush1.bf16.msra.mxu0 %v5142_v41  ;;  %1517 = vmatpush1.bf16.msra.mxu1 %v5145_v42  ;;  %v5243_v41 = vld [vmem:[%s7600_s2 + $0x524] ss:$16 sps:$4 sm:$0xff]   ;;  %v5246_v42 = vld [vmem:[%s7600_s2 + $0x52c] ss:$16 sps:$4 sm:$0xff]  }
  0x68   :  { %1346 = vmatprep.subr.bf16.mxu0 %v5150_v43  ;;  %1518 = vmatprep.subr.bf16.mxu1 %v5153_v44  ;;  %v5241_v43 = vld [vmem:[%s7600_s2 + $0x520] ss:$16 sps:$4 sm:$0xff]   ;;  %v5244_v44 = vld [vmem:[%s7600_s2 + $0x528] ss:$16 sps:$4 sm:$0xff]  }
  0x6b   :  { %1347 = vmatpush1.bf16.msra.mxu0 %v5148_v45  ;;  %1519 = vmatpush1.bf16.msra.mxu1 %v5151_v46  ;;  %v5249_v45 = vld [vmem:[%s7600_s2 + $0x544] ss:$16 sps:$4 sm:$0xff]   ;;  %v5252_v46 = vld [vmem:[%s7600_s2 + $0x54c] ss:$16 sps:$4 sm:$0xff]  }
  0x6c   :  { %1348 = vmatprep.subr.bf16.mxu0 %v5156_v47  ;;  %1520 = vmatprep.subr.bf16.mxu1 %v5159_v48  ;;  %v5247_v47 = vld [vmem:[%s7600_s2 + $0x540] ss:$16 sps:$4 sm:$0xff]   ;;  %v5250_v48 = vld [vmem:[%s7600_s2 + $0x548] ss:$16 sps:$4 sm:$0xff]  }
  0x6f   :  { %1349 = vmatpush1.bf16.msra.mxu0 %v5154_v49  ;;  %1521 = vmatpush1.bf16.msra.mxu1 %v5157_v50  ;;  %v5255_v49 = vld [vmem:[%s7600_s2 + $0x564] ss:$16 sps:$4 sm:$0xff]   ;;  %v5258_v50 = vld [vmem:[%s7600_s2 + $0x56c] ss:$16 sps:$4 sm:$0xff]  }
  0x70   :  { %1350 = vmatprep.subr.bf16.mxu0 %v5162_v51  ;;  %1522 = vmatprep.subr.bf16.mxu1 %v5165_v52  ;;  %v5253_v51 = vld [vmem:[%s7600_s2 + $0x560] ss:$16 sps:$4 sm:$0xff]   ;;  %v5256_v52 = vld [vmem:[%s7600_s2 + $0x568] ss:$16 sps:$4 sm:$0xff]  }
  0x73   :  { %1351 = vmatpush1.bf16.msra.mxu0 %v5160_v53  ;;  %1523 = vmatpush1.bf16.msra.mxu1 %v5163_v54  ;;  %v5261_v53 = vld [vmem:[%s7600_s2 + $0x584] ss:$16 sps:$4 sm:$0xff]   ;;  %v5264_v54 = vld [vmem:[%s7600_s2 + $0x58c] ss:$16 sps:$4 sm:$0xff]  }
  0x74   :  { %1352 = vmatprep.subr.bf16.mxu0 %v5168_v55  ;;  %1524 = vmatprep.subr.bf16.mxu1 %v5171_v56  ;;  %v5259_v55 = vld [vmem:[%s7600_s2 + $0x580] ss:$16 sps:$4 sm:$0xff]   ;;  %v5262_v56 = vld [vmem:[%s7600_s2 + $0x588] ss:$16 sps:$4 sm:$0xff]  }
  0x77   :  { %1353 = vmatpush1.bf16.msra.mxu0 %v5166_v57  ;;  %1525 = vmatpush1.bf16.msra.mxu1 %v5169_v58  ;;  %v5267_v57 = vld [vmem:[%s7600_s2 + $0x5a4] ss:$16 sps:$4 sm:$0xff]   ;;  %v5270_v58 = vld [vmem:[%s7600_s2 + $0x5ac] ss:$16 sps:$4 sm:$0xff]  }
  0x78   :  { %1354 = vmatprep.subr.bf16.mxu0 %v5174_v59  ;;  %1526 = vmatprep.subr.bf16.mxu1 %v5177_v60  ;;  %v5265_v59 = vld [vmem:[%s7600_s2 + $0x5a0] ss:$16 sps:$4 sm:$0xff]   ;;  %v5268_v60 = vld [vmem:[%s7600_s2 + $0x5a8] ss:$16 sps:$4 sm:$0xff]  }
  0x7b   :  { %1355 = vmatpush1.bf16.msra.mxu0 %v5172_v61  ;;  %1527 = vmatpush1.bf16.msra.mxu1 %v5175_v62  ;;  %v5273_v61 = vld [vmem:[%s7600_s2 + $0x5c4] ss:$16 sps:$4 sm:$0xff]   ;;  %v5276_v62 = vld [vmem:[%s7600_s2 + $0x5cc] ss:$16 sps:$4 sm:$0xff]  }
  0x7c   :  { %1356 = vmatprep.subr.bf16.mxu0 %v5180_v63  ;;  %1528 = vmatprep.subr.bf16.mxu1 %v5183_v0  ;;  %v5271_v63 = vld [vmem:[%s7600_s2 + $0x5c0] ss:$16 sps:$4 sm:$0xff]   ;;  %v5274_v0 = vld [vmem:[%s7600_s2 + $0x5c8] ss:$16 sps:$4 sm:$0xff]  }
  0x7f   :  { %1357 = vmatpush1.bf16.msra.mxu0 %v5178_v1  ;;  %1529 = vmatpush1.bf16.msra.mxu1 %v5181_v2  ;;  %v5279_v1 = vld [vmem:[%s7600_s2 + $0x5e4] ss:$16 sps:$4 sm:$0xff]   ;;  %v5282_v2 = vld [vmem:[%s7600_s2 + $0x5ec] ss:$16 sps:$4 sm:$0xff]  }
  0x80   :  { %1369 = vmatprep.subr.bf16.mxu0 %v5189_v3  ;;  %1541 = vmatprep.subr.bf16.mxu1 %v5192_v4  ;;  %v5277_v3 = vld [vmem:[%s7600_s2 + $0x5e0] ss:$16 sps:$4 sm:$0xff]   ;;  %v5280_v4 = vld [vmem:[%s7600_s2 + $0x5e8] ss:$16 sps:$4 sm:$0xff]  }
  0x82   :  { %1359 = vmatmul.mubr.bf16.vlgmr.msra.gmra.mrb[0].mxu0 %v5184_v5  ;;  %1531 = vmatmul.mubr.bf16.vlgmr.msra.gmra.mrb[0].mxu1 %v5184_v5  ;;  %v5288_v5 = vld [vmem:[%s7600_s2 + $0x604] ss:$16 sps:$4 sm:$0xff]  }
  0x83   :  { %1370 = vmatpush1.bf16.msra.mxu0 %v5187_v6  ;;  %1542 = vmatpush1.bf16.msra.mxu1 %v5190_v7  ;;  %v5291_v6 = vld [vmem:[%s7600_s2 + $0x60c] ss:$16 sps:$4 sm:$0xff]  }
  0x84   :  { %1371 = vmatprep.subr.bf16.mxu0 %v5195_v8  ;;  %1543 = vmatprep.subr.bf16.mxu1 %v5198_v9  ;;  %v5283_v7 = vld [vmem:[%s7601_s0 + $0x10] ss:$28 sps:$4 sm:$0xff]   ;;  %v5289_v9 = vld [vmem:[%s7600_s2 + $0x608] ss:$16 sps:$4 sm:$0xff]  }
  0x85   :  { %1401 = vmatprep.mubr.bf16.mxu0 %v5285_v12  ;;  %1573 = vmatprep.mubr.bf16.mxu1 %v5285_v12  ;;  %v5286_v8 = vld [vmem:[%s7600_s2 + $0x600] ss:$16 sps:$4 sm:$0xff]   ;;  %v5292_v12 = vld [vmem:[%s7601_s0 + $0x18] ss:$28 sps:$4 sm:$0xff]  }
  0x87   :  { %1372 = vmatpush1.bf16.msra.mxu0 %v5193_v10  ;;  %1544 = vmatpush1.bf16.msra.mxu1 %v5196_v11  ;;  %v5295_v10 = vld [vmem:[%s7602_s4 + $0x4] ss:$8 sps:$4 sm:$0xff]   ;;  %v5817_v11 = vmov 0  }
  0x88   :  { %1373 = vmatprep.subr.bf16.mxu0 %v5201_v13  ;;  %1545 = vmatprep.subr.bf16.mxu1 %v5204_v14  ;;  %v5293_v13 = vld [vmem:[%s7602_s4] ss:$8 sps:$4 sm:$0xff]   ;;  %v5298_v14 = vld [vmem:[%s7602_s4 + $0x14] ss:$8 sps:$4 sm:$0xff]  }
  0x8b   :  { %1374 = vmatpush1.bf16.msra.mxu0 %v5199_v15  ;;  %1546 = vmatpush1.bf16.msra.mxu1 %v5202_v16  ;;  %v5296_v15 = vld [vmem:[%s7602_s4 + $0x10] ss:$8 sps:$4 sm:$0xff]   ;;  %v5301_v16 = vld [vmem:[%s7602_s4 + $0x24] ss:$8 sps:$4 sm:$0xff]  }
  0x8c   :  { %1375 = vmatprep.subr.bf16.mxu0 %v5207_v17  ;;  %1547 = vmatprep.subr.bf16.mxu1 %v5210_v18  ;;  %v5299_v17 = vld [vmem:[%s7602_s4 + $0x20] ss:$8 sps:$4 sm:$0xff]   ;;  %v5304_v18 = vld [vmem:[%s7602_s4 + $0x34] ss:$8 sps:$4 sm:$0xff]  }
  0x8f   :  { %1376 = vmatpush1.bf16.msra.mxu0 %v5205_v19  ;;  %1548 = vmatpush1.bf16.msra.mxu1 %v5208_v20  ;;  %v5302_v19 = vld [vmem:[%s7602_s4 + $0x30] ss:$8 sps:$4 sm:$0xff]   ;;  %v5307_v20 = vld [vmem:[%s7602_s4 + $0x44] ss:$8 sps:$4 sm:$0xff]  }
  0x90   :  { %1377 = vmatprep.subr.bf16.mxu0 %v5213_v21  ;;  %1549 = vmatprep.subr.bf16.mxu1 %v5216_v22  ;;  %v5305_v21 = vld [vmem:[%s7602_s4 + $0x40] ss:$8 sps:$4 sm:$0xff]   ;;  %v5310_v22 = vld [vmem:[%s7602_s4 + $0x54] ss:$8 sps:$4 sm:$0xff]  }
  0x93   :  { %1378 = vmatpush1.bf16.msra.mxu0 %v5211_v23  ;;  %1550 = vmatpush1.bf16.msra.mxu1 %v5214_v24  ;;  %v5308_v23 = vld [vmem:[%s7602_s4 + $0x50] ss:$8 sps:$4 sm:$0xff]   ;;  %v5313_v24 = vld [vmem:[%s7602_s4 + $0x64] ss:$8 sps:$4 sm:$0xff]  }
  0x94   :  { %1379 = vmatprep.subr.bf16.mxu0 %v5219_v25  ;;  %1551 = vmatprep.subr.bf16.mxu1 %v5222_v26  ;;  %v5311_v25 = vld [vmem:[%s7602_s4 + $0x60] ss:$8 sps:$4 sm:$0xff]   ;;  %v5316_v26 = vld [vmem:[%s7602_s4 + $0x74] ss:$8 sps:$4 sm:$0xff]  }
  0x97   :  { %1380 = vmatpush1.bf16.msra.mxu0 %v5217_v27  ;;  %1552 = vmatpush1.bf16.msra.mxu1 %v5220_v28  ;;  %v5314_v27 = vld [vmem:[%s7602_s4 + $0x70] ss:$8 sps:$4 sm:$0xff]   ;;  %v5319_v28 = vld [vmem:[%s7602_s4 + $0x84] ss:$8 sps:$4 sm:$0xff]  }
  0x98   :  { %1381 = vmatprep.subr.bf16.mxu0 %v5225_v29  ;;  %1553 = vmatprep.subr.bf16.mxu1 %v5228_v30  ;;  %v5317_v29 = vld [vmem:[%s7602_s4 + $0x80] ss:$8 sps:$4 sm:$0xff]   ;;  %v5322_v30 = vld [vmem:[%s7602_s4 + $0x94] ss:$8 sps:$4 sm:$0xff]  }
  0x9b   :  { %1382 = vmatpush1.bf16.msra.mxu0 %v5223_v31  ;;  %1554 = vmatpush1.bf16.msra.mxu1 %v5226_v32  ;;  %v5320_v31 = vld [vmem:[%s7602_s4 + $0x90] ss:$8 sps:$4 sm:$0xff]   ;;  %v5325_v32 = vld [vmem:[%s7602_s4 + $0xa4] ss:$8 sps:$4 sm:$0xff]  }
  0x9c   :  { %1383 = vmatprep.subr.bf16.mxu0 %v5231_v33  ;;  %1555 = vmatprep.subr.bf16.mxu1 %v5234_v34  ;;  %v5323_v33 = vld [vmem:[%s7602_s4 + $0xa0] ss:$8 sps:$4 sm:$0xff]   ;;  %v5328_v34 = vld [vmem:[%s7602_s4 + $0xb4] ss:$8 sps:$4 sm:$0xff]  }
  0x9f   :  { %1384 = vmatpush1.bf16.msra.mxu0 %v5229_v35  ;;  %1556 = vmatpush1.bf16.msra.mxu1 %v5232_v36  ;;  %v5326_v35 = vld [vmem:[%s7602_s4 + $0xb0] ss:$8 sps:$4 sm:$0xff]   ;;  %v5331_v36 = vld [vmem:[%s7602_s4 + $0xc4] ss:$8 sps:$4 sm:$0xff]  }
  0xa0   :  { %1385 = vmatprep.subr.bf16.mxu0 %v5237_v37  ;;  %1557 = vmatprep.subr.bf16.mxu1 %v5240_v38  ;;  %v5329_v37 = vld [vmem:[%s7602_s4 + $0xc0] ss:$8 sps:$4 sm:$0xff]   ;;  %v5334_v38 = vld [vmem:[%s7602_s4 + $0xd4] ss:$8 sps:$4 sm:$0xff]  }
  0xa3   :  { %1386 = vmatpush1.bf16.msra.mxu0 %v5235_v39  ;;  %1558 = vmatpush1.bf16.msra.mxu1 %v5238_v40  ;;  %v5332_v39 = vld [vmem:[%s7602_s4 + $0xd0] ss:$8 sps:$4 sm:$0xff]   ;;  %v5337_v40 = vld [vmem:[%s7602_s4 + $0xe4] ss:$8 sps:$4 sm:$0xff]  }
  0xa4   :  { %1387 = vmatprep.subr.bf16.mxu0 %v5243_v41  ;;  %1559 = vmatprep.subr.bf16.mxu1 %v5246_v42  ;;  %v5335_v41 = vld [vmem:[%s7602_s4 + $0xe0] ss:$8 sps:$4 sm:$0xff]   ;;  %v5340_v42 = vld [vmem:[%s7602_s4 + $0xf4] ss:$8 sps:$4 sm:$0xff]  }
  0xa7   :  { %1388 = vmatpush1.bf16.msra.mxu0 %v5241_v43  ;;  %1560 = vmatpush1.bf16.msra.mxu1 %v5244_v44  ;;  %v5338_v43 = vld [vmem:[%s7602_s4 + $0xf0] ss:$8 sps:$4 sm:$0xff]   ;;  %v5343_v44 = vld [vmem:[%s7602_s4 + $0x104] ss:$8 sps:$4 sm:$0xff]  }
  0xa8   :  { %1389 = vmatprep.subr.bf16.mxu0 %v5249_v45  ;;  %1561 = vmatprep.subr.bf16.mxu1 %v5252_v46  ;;  %v5389_v45 = vld [vmem:[%s7603_s6] ss:$16 sps:$4 sm:$0xff]   ;;  %v5391_v46 = vld [vmem:[%s7603_s6 + $0x4] ss:$16 sps:$4 sm:$0xff]  }
  0xab   :  { %1390 = vmatpush1.bf16.msra.mxu0 %v5247_v47  ;;  %1562 = vmatpush1.bf16.msra.mxu1 %v5250_v48  ;;  %v5392_v47 = vld [vmem:[%s7603_s6 + $0x20] ss:$16 sps:$4 sm:$0xff]   ;;  %v5394_v48 = vld [vmem:[%s7603_s6 + $0x24] ss:$16 sps:$4 sm:$0xff]  }
  0xac   :  { %1391 = vmatprep.subr.bf16.mxu0 %v5255_v49  ;;  %1563 = vmatprep.subr.bf16.mxu1 %v5258_v50  ;;  %v244_v49 = vlaneseq }
  0xae   :  { %v6603_v50 = vshrl.u32 %v244_v49, 7  ;;  %v5377_v49 = vld [vmem:[%s7602_s4 + $0x1c0] ss:$8 sps:$4 sm:$0xff]  }
  0xaf   :  { %1392 = vmatpush1.bf16.msra.mxu0 %v5253_v51  ;;  %1564 = vmatpush1.bf16.msra.mxu1 %v5256_v52 }
  0xb0   :  { %1393 = vmatprep.subr.bf16.mxu0 %v5261_v53  ;;  %1565 = vmatprep.subr.bf16.mxu1 %v5264_v54  ;;  %v6606_v51 = vsub.s32 0, %v6603_v50  ;;  %v6609_v52 = vsub.s32 2, %v6603_v50  ;;  %v242_v53 = vld [vmem:[%s7604_s3] sm:$0xf]  ;;  %v6615_v54 = vsub.s32 1, %v6603_v50 }
  0xb3   :  { %1394 = vmatpush1.bf16.msra.mxu0 %v5259_v55  ;;  %1566 = vmatpush1.bf16.msra.mxu1 %v5262_v56  ;;  %v6618_v55 = vsub.s32 3, %v6603_v50  ;;  %v247_v56 = vrot.slane %v242_v53, %v6606_v51 }
  0xb4   :  { %1395 = vmatprep.subr.bf16.mxu0 %v5267_v57  ;;  %1567 = vmatprep.subr.bf16.mxu1 %v5270_v58  ;;  %v255_v57 = vrot.slane %v242_v53, %v6609_v52  ;;  %v251_v58 = vrot.slane %v242_v53, %v6615_v54 }
  0xb7   :  { %1396 = vmatpush1.bf16.msra.mxu0 %v5265_v59  ;;  %1568 = vmatpush1.bf16.msra.mxu1 %v5268_v60  ;;  %v259_v59 = vrot.slane %v242_v53, %v6618_v55  ;;  %v5382_v53 = vld [vmem:[%s7602_s4 + $0x1d4] ss:$8 sps:$4 sm:$0xff]  }
  0xb8   :  { %1397 = vmatprep.subr.bf16.mxu0 %v5273_v61  ;;  %1569 = vmatprep.subr.bf16.mxu1 %v5276_v62 }
  0xbb   :  { %1398 = vmatpush1.bf16.msra.mxu0 %v5271_v63  ;;  %1570 = vmatpush1.bf16.msra.mxu1 %v5274_v0 }
  0xbc   :  { %1399 = vmatprep.subr.bf16.mxu0 %v5279_v1  ;;  %1571 = vmatprep.subr.bf16.mxu1 %v5282_v2 }
  0xbf   :  { %1400 = vmatpush1.bf16.msra.mxu0 %v5277_v3  ;;  %1572 = vmatpush1.bf16.msra.mxu1 %v5280_v4 }
  0xc0   :  { %1412 = vmatprep.subr.bf16.mxu0 %v5288_v5  ;;  %1584 = vmatprep.subr.bf16.mxu1 %v5291_v6 }
  0xc2   :  { %1402 = vmatmul.mubr.bf16.vlgmr.msra.gmra.mrb[0].mxu0 %v5283_v7  ;;  %1574 = vmatmul.mubr.bf16.vlgmr.msra.gmra.mrb[0].mxu1 %v5283_v7 }
  0xc3   :  { %1413 = vmatpush1.bf16.msra.mxu0 %v5286_v8  ;;  %1585 = vmatpush1.bf16.msra.mxu1 %v5289_v9 }
  0xc4   :  { %1444 = vmatprep.mubr.bf16.mxu0 %v5817_v11  ;;  %1616 = vmatprep.mubr.bf16.mxu1 %v5817_v11 }
  0xc5   :  { %2035 = vmatprep.subr.bf16.mxu0 %v5295_v10  ;;  %2348 = vmatprep.subr.bf16.mxu1 %v5391_v46  ;;  %v5376_v46 = vld [vmem:[%s7602_s4 + $0x1b4] ss:$8 sps:$4 sm:$0xff]  }
  0xce   :  { %4544 = vmatmul.mubr.msk.bf16.vlgmr.msra.gmra.mrb[0].mxu0 %vm1279_vm0, %v5292_v12  ;;  %4545 = vmatmul.mubr.msk.bf16.vlgmr.msra.gmra.mrb[0].mxu1 %vm1279_vm0, %v5292_v12 }
  0xcf   :  { %2036 = vmatpush1.bf16.msra.mxu0 %v5293_v13  ;;  %2380 = vmatprep.mubr.bf16.mxu1 %v5817_v11 }
  0xd0   :  { %2037 = vmatprep.subr.bf16.mxu0 %v5298_v14  ;;  %2349 = vmatpush1.bf16.msra.mxu1 %v5389_v45  ;;  %v5371_v45 = vld [vmem:[%s7602_s4 + $0x1a0] ss:$8 sps:$4 sm:$0xff]  }
  0xd1   :  { %2350 = vmatprep.subr.bf16.mxu1 %v5394_v48  ;;  %v5379_v48 = vld [vmem:[%s7602_s4 + $0x1c4] ss:$8 sps:$4 sm:$0xff]  }
  0xd3   :  { %2038 = vmatpush1.bf16.msra.mxu0 %v5296_v15 }
  0xd4   :  { %2039 = vmatprep.subr.bf16.mxu0 %v5301_v16  ;;  %2351 = vmatpush1.bf16.msra.mxu1 %v5392_v47  ;;  %v5374_v47 = vld [vmem:[%s7602_s4 + $0x1b0] ss:$8 sps:$4 sm:$0xff]  }
  0xd7   :  { %2040 = vmatpush1.bf16.msra.mxu0 %v5299_v17 }
  0xd8   :  { %2041 = vmatprep.subr.bf16.mxu0 %v5304_v18 }
  0xdb   :  { %2042 = vmatpush1.bf16.msra.mxu0 %v5302_v19 }
  0xdc   :  { %2043 = vmatprep.subr.bf16.mxu0 %v5307_v20 }
  0xdf   :  { %2044 = vmatpush1.bf16.msra.mxu0 %v5305_v21 }
  0xe0   :  { %2045 = vmatprep.subr.bf16.mxu0 %v5310_v22 }
  0xe3   :  { %2046 = vmatpush1.bf16.msra.mxu0 %v5308_v23 }
  0xe4   :  { %2047 = vmatprep.subr.bf16.mxu0 %v5313_v24 }
  0xe7   :  { %2048 = vmatpush1.bf16.msra.mxu0 %v5311_v25  ;;  %v5341_v25 = vld [vmem:[%s7602_s4 + $0x100] ss:$8 sps:$4 sm:$0xff]  }
  0xe8   :  { %2049 = vmatprep.subr.bf16.mxu0 %v5316_v26  ;;  %v5346_v26 = vld [vmem:[%s7602_s4 + $0x114] ss:$8 sps:$4 sm:$0xff]  }
  0xeb   :  { %2050 = vmatpush1.bf16.msra.mxu0 %v5314_v27  ;;  %v5344_v27 = vld [vmem:[%s7602_s4 + $0x110] ss:$8 sps:$4 sm:$0xff]  }
  0xec   :  { %2051 = vmatprep.subr.bf16.mxu0 %v5319_v28  ;;  %v5349_v28 = vld [vmem:[%s7602_s4 + $0x124] ss:$8 sps:$4 sm:$0xff]  }
  0xef   :  { %2052 = vmatpush1.bf16.msra.mxu0 %v5317_v29  ;;  %v5347_v29 = vld [vmem:[%s7602_s4 + $0x120] ss:$8 sps:$4 sm:$0xff]  }
  0xf0   :  { %2053 = vmatprep.subr.bf16.mxu0 %v5322_v30  ;;  %v5352_v30 = vld [vmem:[%s7602_s4 + $0x134] ss:$8 sps:$4 sm:$0xff]  }
  0xf3   :  { %2054 = vmatpush1.bf16.msra.mxu0 %v5320_v31  ;;  %v5350_v31 = vld [vmem:[%s7602_s4 + $0x130] ss:$8 sps:$4 sm:$0xff]  }
  0xf4   :  { %2055 = vmatprep.subr.bf16.mxu0 %v5325_v32  ;;  %v5355_v32 = vld [vmem:[%s7602_s4 + $0x144] ss:$8 sps:$4 sm:$0xff]  }
  0xf7   :  { %2056 = vmatpush1.bf16.msra.mxu0 %v5323_v33  ;;  %v5353_v33 = vld [vmem:[%s7602_s4 + $0x140] ss:$8 sps:$4 sm:$0xff]  }
  0xf8   :  { %2057 = vmatprep.subr.bf16.mxu0 %v5328_v34  ;;  %v5358_v34 = vld [vmem:[%s7602_s4 + $0x154] ss:$8 sps:$4 sm:$0xff]  }
  0xfb   :  { %2058 = vmatpush1.bf16.msra.mxu0 %v5326_v35  ;;  %v5356_v35 = vld [vmem:[%s7602_s4 + $0x150] ss:$8 sps:$4 sm:$0xff]  }
  0xfc   :  { %2059 = vmatprep.subr.bf16.mxu0 %v5331_v36  ;;  %v5361_v36 = vld [vmem:[%s7602_s4 + $0x164] ss:$8 sps:$4 sm:$0xff]  }
  0xff   :  { %2060 = vmatpush1.bf16.msra.mxu0 %v5329_v37  ;;  %v5359_v37 = vld [vmem:[%s7602_s4 + $0x160] ss:$8 sps:$4 sm:$0xff]  }
 0x100   :  { %2061 = vmatprep.subr.bf16.mxu0 %v5334_v38  ;;  %v5364_v38 = vld [vmem:[%s7602_s4 + $0x174] ss:$8 sps:$4 sm:$0xff]  }
 0x103   :  { %2062 = vmatpush1.bf16.msra.mxu0 %v5332_v39  ;;  %v5362_v39 = vld [vmem:[%s7602_s4 + $0x170] ss:$8 sps:$4 sm:$0xff]  }
 0x104   :  { %2063 = vmatprep.subr.bf16.mxu0 %v5337_v40  ;;  %v5367_v40 = vld [vmem:[%s7602_s4 + $0x184] ss:$8 sps:$4 sm:$0xff]  }
 0x107   :  { %2064 = vmatpush1.bf16.msra.mxu0 %v5335_v41  ;;  %v5365_v41 = vld [vmem:[%s7602_s4 + $0x180] ss:$8 sps:$4 sm:$0xff]  }
 0x108   :  { %2065 = vmatprep.subr.bf16.mxu0 %v5340_v42  ;;  %v5370_v42 = vld [vmem:[%s7602_s4 + $0x194] ss:$8 sps:$4 sm:$0xff]  }
 0x10b   :  { %2066 = vmatpush1.bf16.msra.mxu0 %v5338_v43  ;;  %v5368_v43 = vld [vmem:[%s7602_s4 + $0x190] ss:$8 sps:$4 sm:$0xff]  }
 0x10c   :  { %2078 = vmatprep.subr.bf16.mxu0 %v5343_v44  ;;  %v5373_v44 = vld [vmem:[%s7602_s4 + $0x1a4] ss:$8 sps:$4 sm:$0xff]  }
 0x1a1   :  { %v1446_v60 = vpop.f32.mrb[0].mxu0  ;;  %v1618_v61 = vpop.f32.mrb[0].mxu1 }
 0x1a2   :  { %v4924_v62 = vadd.f32 %v1446_v60, %v247_v56  ;;  %v4928_v63 = vadd.f32 %v1618_v61, %v255_v57  ;;  %v1448_v0 = vpop.f32.mrb[1].mxu0  ;;  %v1620_v1 = vpop.f32.mrb[1].mxu1  ;;  %v5386_v60 = vld [vmem:[%s7602_s4 + $0x1f0] ss:$8 sps:$4 sm:$0xff]   ;;  %v5397_v61 = vld [vmem:[%s7603_s6 + $0x44] ss:$16 sps:$4 sm:$0xff]  }
 0x1a3   :  { %v4925_v2 = vadd.f32 %v1448_v0, %v251_v58  ;;  %v4929_v3 = vadd.f32 %v1620_v1, %v259_v59  ;;  %v1450_v4 = vpop.f32.mrb[2].mxu0  ;;  %v1622_v5 = vpop.f32.mrb[2].mxu1  ;;  %2352 = vmatprep.subr.bf16.mxu1 %v5397_v61  ;;  %v5398_v0 = vld [vmem:[%s7603_s6 + $0x60] ss:$16 sps:$4 sm:$0xff]   ;;  %v5403_v1 = vld [vmem:[%s7603_s6 + $0x84] ss:$16 sps:$4 sm:$0xff]  }
 0x1a4   :  { %v4926_v6 = vadd.f32 %v1450_v4, %v247_v56  ;;  %v4930_v7 = vadd.f32 %v1622_v5, %v255_v57  ;;  %v1452_v8 = vpop.f32.mrb[3].mxu0  ;;  %v1624_v9 = vpop.f32.mrb[3].mxu1  ;;  %v1627_v13 = vmax.f32 %v4924_v62, 0.0  ;;  %v1629_v14 = vmax.f32 %v4928_v63, 0.0  ;;  %v5380_v56 = vld [vmem:[%s7602_s4 + $0x1d0] ss:$8 sps:$4 sm:$0xff]  }
 0x1a5   :  { %v4927_v10 = vadd.f32 %v1452_v8, %v251_v58  ;;  %v4931_v12 = vadd.f32 %v1624_v9, %v259_v59  ;;  %v1628_v17 = vmax.f32 %v4925_v2, 0.0  ;;  %v1630_v18 = vmax.f32 %v4929_v3, 0.0  ;;  %v5385_v57 = vld [vmem:[%s7602_s4 + $0x1e4] ss:$8 sps:$4 sm:$0xff]   ;;  %v5383_v58 = vld [vmem:[%s7602_s4 + $0x1e0] ss:$8 sps:$4 sm:$0xff]  }
 0x1a6   :  { %v1631_v15 = vmax.f32 %v4926_v6, 0.0  ;;  %v1633_v16 = vmax.f32 %v4930_v7, 0.0  ;;  %v5388_v59 = vld [vmem:[%s7602_s4 + $0x1f4] ss:$8 sps:$4 sm:$0xff]   ;;  %v5395_v62 = vld [vmem:[%s7603_s6 + $0x40] ss:$16 sps:$4 sm:$0xff]  }
 0x1a7   :  { %v1632_v19 = vmax.f32 %v4927_v10, 0.0  ;;  %v1634_v20 = vmax.f32 %v4931_v12, 0.0  ;;  %2353 = vmatpush1.bf16.msra.mxu1 %v5395_v62  ;;  %v5400_v63 = vld [vmem:[%s7603_s6 + $0x64] ss:$16 sps:$4 sm:$0xff]   ;;  %v5401_v2 = vld [vmem:[%s7603_s6 + $0x80] ss:$16 sps:$4 sm:$0xff]  }
 0x1a8   :  { %v1635_v21 = vpack.c.bf16 %v1631_v15, %v1627_v13  ;;  %v6624_v22 = vpack.c.bf16 %v1633_v16, %v1629_v14  ;;  %2354 = vmatprep.subr.bf16.mxu1 %v5400_v63  ;;  %v5406_v3 = vld [vmem:[%s7603_s6 + $0xa4] ss:$16 sps:$4 sm:$0xff]   ;;  %v5404_v4 = vld [vmem:[%s7603_s6 + $0xa0] ss:$16 sps:$4 sm:$0xff]   ;;  %v5415_v9 = vld [vmem:[%s7603_s6 + $0xc] ss:$16 sps:$4 sm:$0xff]  }
 0x1a9   :  { %v1636_v23 = vpack.c.bf16 %v1632_v19, %v1628_v17  ;;  %v1638_v24 = vpack.c.bf16 %v1634_v20, %v1630_v18  ;;  %v5409_v5 = vld [vmem:[%s7603_s6 + $0xc4] ss:$16 sps:$4 sm:$0xff]   ;;  %v5407_v6 = vld [vmem:[%s7603_s6 + $0xc0] ss:$16 sps:$4 sm:$0xff]   ;;  %v5442_v12 = vld [vmem:[%s7605_s8 + $0xc] ss:$28 sps:$4 sm:$0xff]  }
 0x1aa   :  { %v5412_v7 = vld [vmem:[%s7603_s6 + $0xe4] ss:$16 sps:$4 sm:$0xff]   ;;  %v5410_v8 = vld [vmem:[%s7603_s6 + $0xe0] ss:$16 sps:$4 sm:$0xff]   ;;  %v5454_v15 = vld [vmem:[%s7605_s8 + $0x7c] ss:$28 sps:$4 sm:$0xff]  }
 0x1ab   :  { %2067 = vmatprep.mubr.bf16.mxu0 %v1636_v23  ;;  %2355 = vmatpush1.bf16.msra.mxu1 %v5398_v0  ;;  %v5440_v10 = vld [vmem:[%s7605_s8 + $0x8] ss:$28 sps:$4 sm:$0xff]   ;;  %v5446_v13 = vld [vmem:[%s7605_s8 + $0x40] ss:$28 sps:$4 sm:$0xff]   ;;  %v5452_v16 = vld [vmem:[%s7605_s8 + $0x78] ss:$28 sps:$4 sm:$0xff]  }
 0x1ac   :  { %2068 = vmatmul.mubr.bf16.vlgmr.msra.gmra.mrb[4].mxu0 %v1635_v21  ;;  %2356 = vmatprep.subr.bf16.mxu1 %v5403_v1  ;;  %v5448_v14 = vld [vmem:[%s7605_s8 + $0x44] ss:$28 sps:$4 sm:$0xff]   ;;  %v5460_v17 = vld [vmem:[%s7605_s8 + $0xb4] ss:$28 sps:$4 sm:$0xff]   ;;  %v5466_v19 = vld [vmem:[%s7605_s8 + $0xec] ss:$28 sps:$4 sm:$0xff]  }
 0x1ad   :  { %2079 = vmatpush1.bf16.msra.mxu0 %v5341_v25  ;;  %2110 = vmatprep.mubr.bf16.mxu0 %v1638_v24  ;;  %v5458_v18 = vld [vmem:[%s7605_s8 + $0xb0] ss:$28 sps:$4 sm:$0xff]   ;;  %v5464_v20 = vld [vmem:[%s7605_s8 + $0xe8] ss:$28 sps:$4 sm:$0xff]   ;;  %v5478_v23 = vld [vmem:[%s7605_s8 + $0x15c] ss:$28 sps:$4 sm:$0xff]  }
 0x1ae   :  { %2080 = vmatprep.subr.bf16.mxu0 %v5346_v26  ;;  %v5472_v21 = vld [vmem:[%s7605_s8 + $0x124] ss:$28 sps:$4 sm:$0xff]   ;;  %v5476_v24 = vld [vmem:[%s7605_s8 + $0x158] ss:$28 sps:$4 sm:$0xff]   ;;  %v5482_v26 = vld [vmem:[%s7605_s8 + $0x190] ss:$28 sps:$4 sm:$0xff]  }
 0x1af   :  { %2357 = vmatpush1.bf16.msra.mxu1 %v5401_v2  ;;  %v5484_v25 = vld [vmem:[%s7605_s8 + $0x194] ss:$28 sps:$4 sm:$0xff]   ;;  %v5413_v2 = vld [vmem:[%s7603_s6 + $0x8] ss:$16 sps:$4 sm:$0xff]  }
 0x1b0   :  { %2358 = vmatprep.subr.bf16.mxu1 %v5406_v3 }
 0x1b1   :  { %2081 = vmatpush1.bf16.msra.mxu0 %v5344_v27  ;;  %v5490_v27 = vld [vmem:[%s7605_s8 + $0x1cc] ss:$28 sps:$4 sm:$0xff]  }
 0x1b2   :  { %2082 = vmatprep.subr.bf16.mxu0 %v5349_v28  ;;  %v5488_v28 = vld [vmem:[%s7605_s8 + $0x1c8] ss:$28 sps:$4 sm:$0xff]  }
 0x1b3   :  { %2359 = vmatpush1.bf16.msra.mxu1 %v5404_v4  ;;  %v5418_v4 = vld [vmem:[%s7603_s6 + $0x2c] ss:$16 sps:$4 sm:$0xff]  }
 0x1b4   :  { %2360 = vmatprep.subr.bf16.mxu1 %v5409_v5 }
 0x1b5   :  { %2083 = vmatpush1.bf16.msra.mxu0 %v5347_v29  ;;  %v5496_v29 = vld [vmem:[%s7605_s8 + $0x204] ss:$28 sps:$4 sm:$0xff]  }
 0x1b6   :  { %2084 = vmatprep.subr.bf16.mxu0 %v5352_v30  ;;  %v5494_v30 = vld [vmem:[%s7605_s8 + $0x200] ss:$28 sps:$4 sm:$0xff]  }
 0x1b7   :  { %2361 = vmatpush1.bf16.msra.mxu1 %v5407_v6  ;;  %v5416_v6 = vld [vmem:[%s7603_s6 + $0x28] ss:$16 sps:$4 sm:$0xff]  }
 0x1b8   :  { %2362 = vmatprep.subr.bf16.mxu1 %v5412_v7  ;;  %v5421_v7 = vld [vmem:[%s7603_s6 + $0x4c] ss:$16 sps:$4 sm:$0xff]  }
 0x1b9   :  { %2085 = vmatpush1.bf16.msra.mxu0 %v5350_v31  ;;  %v5502_v31 = vld [vmem:[%s7605_s8 + $0x23c] ss:$28 sps:$4 sm:$0xff]  }
 0x1ba   :  { %2086 = vmatprep.subr.bf16.mxu0 %v5355_v32  ;;  %v5500_v32 = vld [vmem:[%s7605_s8 + $0x238] ss:$28 sps:$4 sm:$0xff]  }
 0x1bb   :  { %2363 = vmatpush1.bf16.msra.mxu1 %v5410_v8  ;;  %v5419_v8 = vld [vmem:[%s7603_s6 + $0x48] ss:$16 sps:$4 sm:$0xff]  }
 0x1bc   :  { %2391 = vmatprep.subr.bf16.mxu1 %v5415_v9  ;;  %v5424_v9 = vld [vmem:[%s7603_s6 + $0x6c] ss:$16 sps:$4 sm:$0xff]  }
 0x1bd   :  { %2087 = vmatpush1.bf16.msra.mxu0 %v5353_v33  ;;  %v5508_v33 = vld [vmem:[%s7605_s8 + $0x274] ss:$28 sps:$4 sm:$0xff]  }
 0x1be   :  { %2088 = vmatprep.subr.bf16.mxu0 %v5358_v34  ;;  %v5506_v34 = vld [vmem:[%s7605_s8 + $0x270] ss:$28 sps:$4 sm:$0xff]  }
 0x1c1   :  { %2089 = vmatpush1.bf16.msra.mxu0 %v5356_v35  ;;  %v5514_v35 = vld [vmem:[%s7605_s8 + $0x2ac] ss:$28 sps:$4 sm:$0xff]  }
 0x1c2   :  { %2090 = vmatprep.subr.bf16.mxu0 %v5361_v36  ;;  %v5512_v36 = vld [vmem:[%s7605_s8 + $0x2a8] ss:$28 sps:$4 sm:$0xff]  }
 0x1c5   :  { %2091 = vmatpush1.bf16.msra.mxu0 %v5359_v37  ;;  %v5520_v37 = vld [vmem:[%s7605_s8 + $0x2e4] ss:$28 sps:$4 sm:$0xff]  }
 0x1c6   :  { %2092 = vmatprep.subr.bf16.mxu0 %v5364_v38  ;;  %v5518_v38 = vld [vmem:[%s7605_s8 + $0x2e0] ss:$28 sps:$4 sm:$0xff]  }
 0x1c9   :  { %2093 = vmatpush1.bf16.msra.mxu0 %v5362_v39  ;;  %v1703_v39 = vld [vmem:[%s7606_s5] sm:$0x3] }
 0x1ca   :  { %2094 = vmatprep.subr.bf16.mxu0 %v5367_v40  ;;  %v1708_v40 = vrot.slane %v1703_v39, %v6606_v51 }
 0x1cd   :  { %2095 = vmatpush1.bf16.msra.mxu0 %v5365_v41  ;;  %v1712_v41 = vrot.slane %v1703_v39, %v6615_v54  ;;  %v5499_v39 = vld [vmem:[%s7605_s8 + $0x234] ss:$28 sps:$4 sm:$0xff]  }
 0x1ce   :  { %2096 = vmatprep.subr.bf16.mxu0 %v5370_v42 }
 0x1d1   :  { %2097 = vmatpush1.bf16.msra.mxu0 %v5368_v43 }
 0x1d2   :  { %2098 = vmatprep.subr.bf16.mxu0 %v5373_v44 }
 0x1d5   :  { %2099 = vmatpush1.bf16.msra.mxu0 %v5371_v45 }
 0x1d6   :  { %2100 = vmatprep.subr.bf16.mxu0 %v5376_v46 }
 0x1d9   :  { %2101 = vmatpush1.bf16.msra.mxu0 %v5374_v47 }
 0x1da   :  { %2102 = vmatprep.subr.bf16.mxu0 %v5379_v48 }
 0x1dd   :  { %2103 = vmatpush1.bf16.msra.mxu0 %v5377_v49 }
 0x1de   :  { %2104 = vmatprep.subr.bf16.mxu0 %v5382_v53 }
 0x1e1   :  { %2105 = vmatpush1.bf16.msra.mxu0 %v5380_v56 }
 0x1e2   :  { %2106 = vmatprep.subr.bf16.mxu0 %v5385_v57 }
 0x1e5   :  { %2107 = vmatpush1.bf16.msra.mxu0 %v5383_v58 }
 0x1e6   :  { %2108 = vmatprep.subr.bf16.mxu0 %v5388_v59  ;;  %v2127_v59 = vld [vmem:[%s7608_s1] sm:$0xff] }
 0x1e9   :  { %2109 = vmatpush1.bf16.msra.mxu0 %v5386_v60  ;;  %v2128_v60 = vld [vmem:[%s7608_s1 + $0x8] sm:$0xff] }
 0x1ea   :  { %3977 = vmatprep.subr.bf16.mxu0 %v5442_v12  ;;  %v5425_v12 = vld [vmem:[%s7603_s6 + $0x88] ss:$16 sps:$4 sm:$0xff]  }
 0x1ec   :  { %2111 = vmatmul.mubr.bf16.vlgmr.msra.gmra.mrb[4].mxu0 %v6624_v22  ;;  %v5470_v22 = vld [vmem:[%s7605_s8 + $0x120] ss:$28 sps:$4 sm:$0xff]  }
 0x1ed   :  { %3978 = vmatpush1.bf16.msra.mxu0 %v5440_v10  ;;  %v5422_v10 = vld [vmem:[%s7603_s6 + $0x68] ss:$16 sps:$4 sm:$0xff]  }
 0x1ee   :  { %3979 = vmatprep.subr.bf16.mxu0 %v5448_v14  ;;  %v5428_v14 = vld [vmem:[%s7603_s6 + $0xa8] ss:$16 sps:$4 sm:$0xff]  }
 0x1f1   :  { %3980 = vmatpush1.bf16.msra.mxu0 %v5446_v13  ;;  %v5430_v13 = vld [vmem:[%s7603_s6 + $0xac] ss:$16 sps:$4 sm:$0xff]  }
 0x1f2   :  { %3981 = vmatprep.subr.bf16.mxu0 %v5454_v15  ;;  %v5433_v15 = vld [vmem:[%s7603_s6 + $0xcc] ss:$16 sps:$4 sm:$0xff]  }
 0x1f5   :  { %3982 = vmatpush1.bf16.msra.mxu0 %v5452_v16  ;;  %v5431_v16 = vld [vmem:[%s7603_s6 + $0xc8] ss:$16 sps:$4 sm:$0xff]  }
 0x1f6   :  { %3983 = vmatprep.subr.bf16.mxu0 %v5460_v17  ;;  %v5436_v17 = vld [vmem:[%s7603_s6 + $0xec] ss:$16 sps:$4 sm:$0xff]  }
 0x1f9   :  { %3984 = vmatpush1.bf16.msra.mxu0 %v5458_v18  ;;  %v5434_v18 = vld [vmem:[%s7603_s6 + $0xe8] ss:$16 sps:$4 sm:$0xff]  }
 0x1fa   :  { %3985 = vmatprep.subr.bf16.mxu0 %v5466_v19  ;;  %v5439_v19 = vld [vmem:[%s7605_s8 + $0x4] ss:$28 sps:$4 sm:$0xff]  }
 0x1fd   :  { %3986 = vmatpush1.bf16.msra.mxu0 %v5464_v20  ;;  %v5437_v20 = vld [vmem:[%s7605_s8] ss:$28 sps:$4 sm:$0xff]  }
 0x1fe   :  { %3987 = vmatprep.subr.bf16.mxu0 %v5472_v21  ;;  %v5445_v21 = vld [vmem:[%s7605_s8 + $0x3c] ss:$28 sps:$4 sm:$0xff]  }
 0x201   :  { %3988 = vmatpush1.bf16.msra.mxu0 %v5470_v22  ;;  %v5443_v22 = vld [vmem:[%s7605_s8 + $0x38] ss:$28 sps:$4 sm:$0xff]  }
 0x202   :  { %3989 = vmatprep.subr.bf16.mxu0 %v5478_v23  ;;  %v5451_v23 = vld [vmem:[%s7605_s8 + $0x74] ss:$28 sps:$4 sm:$0xff]  }
 0x205   :  { %3990 = vmatpush1.bf16.msra.mxu0 %v5476_v24  ;;  %v5449_v24 = vld [vmem:[%s7605_s8 + $0x70] ss:$28 sps:$4 sm:$0xff]  }
 0x206   :  { %3991 = vmatprep.subr.bf16.mxu0 %v5484_v25  ;;  %v5457_v25 = vld [vmem:[%s7605_s8 + $0xac] ss:$28 sps:$4 sm:$0xff]  }
 0x209   :  { %3992 = vmatpush1.bf16.msra.mxu0 %v5482_v26  ;;  %v5455_v26 = vld [vmem:[%s7605_s8 + $0xa8] ss:$28 sps:$4 sm:$0xff]  }
 0x20a   :  { %3993 = vmatprep.subr.bf16.mxu0 %v5490_v27  ;;  %v5463_v27 = vld [vmem:[%s7605_s8 + $0xe4] ss:$28 sps:$4 sm:$0xff]  }
 0x20d   :  { %3994 = vmatpush1.bf16.msra.mxu0 %v5488_v28  ;;  %v5461_v28 = vld [vmem:[%s7605_s8 + $0xe0] ss:$28 sps:$4 sm:$0xff]  }
 0x20e   :  { %3995 = vmatprep.subr.bf16.mxu0 %v5496_v29  ;;  %v5469_v29 = vld [vmem:[%s7605_s8 + $0x11c] ss:$28 sps:$4 sm:$0xff]  }
 0x211   :  { %3996 = vmatpush1.bf16.msra.mxu0 %v5494_v30  ;;  %v5467_v30 = vld [vmem:[%s7605_s8 + $0x118] ss:$28 sps:$4 sm:$0xff]  }
 0x212   :  { %3997 = vmatprep.subr.bf16.mxu0 %v5502_v31  ;;  %v5475_v31 = vld [vmem:[%s7605_s8 + $0x154] ss:$28 sps:$4 sm:$0xff]  }
 0x215   :  { %3998 = vmatpush1.bf16.msra.mxu0 %v5500_v32  ;;  %v5473_v32 = vld [vmem:[%s7605_s8 + $0x150] ss:$28 sps:$4 sm:$0xff]  }
 0x216   :  { %3999 = vmatprep.subr.bf16.mxu0 %v5508_v33  ;;  %v5481_v33 = vld [vmem:[%s7605_s8 + $0x18c] ss:$28 sps:$4 sm:$0xff]  }
 0x219   :  { %4000 = vmatpush1.bf16.msra.mxu0 %v5506_v34  ;;  %v5479_v34 = vld [vmem:[%s7605_s8 + $0x188] ss:$28 sps:$4 sm:$0xff]  }
 0x21a   :  { %4001 = vmatprep.subr.bf16.mxu0 %v5514_v35  ;;  %v5487_v35 = vld [vmem:[%s7605_s8 + $0x1c4] ss:$28 sps:$4 sm:$0xff]  }
 0x21d   :  { %4002 = vmatpush1.bf16.msra.mxu0 %v5512_v36  ;;  %v5485_v36 = vld [vmem:[%s7605_s8 + $0x1c0] ss:$28 sps:$4 sm:$0xff]  }
 0x21e   :  { %4003 = vmatprep.subr.bf16.mxu0 %v5520_v37  ;;  %v5493_v37 = vld [vmem:[%s7605_s8 + $0x1fc] ss:$28 sps:$4 sm:$0xff]  }
 0x221   :  { %4004 = vmatpush1.bf16.msra.mxu0 %v5518_v38  ;;  %v5491_v38 = vld [vmem:[%s7605_s8 + $0x1f8] ss:$28 sps:$4 sm:$0xff]  }
 0x2bf   :  { %v2112_v42 = vpop.f32.mrb[4].mxu0 }
 0x2c0   :  { %v4932_v43 = vadd.f32 %v2112_v42, %v1708_v40  ;;  %v2114_v44 = vpop.f32.mrb[5].mxu0  ;;  %v5503_v42 = vld [vmem:[%s7605_s8 + $0x268] ss:$28 sps:$4 sm:$0xff]  }
 0x2c1   :  { %v4933_v45 = vadd.f32 %v2114_v44, %v1712_v41  ;;  %v2116_v46 = vpop.f32.mrb[6].mxu0  ;;  %v5509_v44 = vld [vmem:[%s7605_s8 + $0x2a0] ss:$28 sps:$4 sm:$0xff]  }
 0x2c2   :  { %4329 = vst [vmem:[%s7607_s11] sm:$0xff] %v4932_v43  ;;  %v4934_v47 = vadd.f32 %v2116_v46, %v1708_v40  ;;  %v2118_v48 = vpop.f32.mrb[7].mxu0  ;;  %v5497_v40 = vld [vmem:[%s7605_s8 + $0x230] ss:$28 sps:$4 sm:$0xff]   ;;  %v5515_v46 = vld [vmem:[%s7605_s8 + $0x2d8] ss:$28 sps:$4 sm:$0xff]  }
 0x2c3   :  { %v2121_v49 = vmul.f32 0.5, %v4933_v45  ;;  %4330 = vst [vmem:[%s7607_s11 + $0x8] sm:$0xff] %v4933_v45  ;;  %v4935_v53 = vadd.f32 %v2118_v48, %v1712_v41  ;;  %v5505_v41 = vld [vmem:[%s7605_s8 + $0x26c] ss:$28 sps:$4 sm:$0xff]   ;;  %v5517_v45 = vld [vmem:[%s7605_s8 + $0x2dc] ss:$28 sps:$4 sm:$0xff]  }
 0x2c4   :  { %4331 = vst [vmem:[%s7607_s11 + $0x10] sm:$0xff] %v4934_v47  ;;  %v5526_v48 = vld [vmem:[%s7605_s8 + $0x31c] ss:$28 sps:$4 sm:$0xff]  }
 0x2c5   :  { %v2123_v56 = vmul.f32 1.442695, %v2121_v49  ;;  %v2122_v57 = vmul.f32 0.5, %v4935_v53  ;;  %4332 = vst [vmem:[%s7607_s11 + $0x18] sm:$0xff] %v4935_v53  ;;  %v5521_v49 = vld [vmem:[%s7605_s8 + $0x310] ss:$28 sps:$4 sm:$0xff]   ;;  %4005 = vmatprep.subr.bf16.mxu0 %v5526_v48 }
 0x2c6   :  { %v5524_v53 = vld [vmem:[%s7605_s8 + $0x318] ss:$28 sps:$4 sm:$0xff]  }
 0x2c7   :  { %5757 = vpow2.f32 %v2123_v56  ;;  %v2125_v58 = vmul.f32 1.442695, %v2122_v57  ;;  %4006 = vmatpush1.bf16.msra.mxu0 %v5524_v53  ;;  %v5529_v56 = vld [vmem:[%s7605_s8 + $0x34c] ss:$28 sps:$4 sm:$0xff]   ;;  %v5532_v57 = vld [vmem:[%s7605_s8 + $0x354] ss:$28 sps:$4 sm:$0xff]  }
 0x2c8   :  { %4007 = vmatprep.subr.bf16.mxu0 %v5532_v57 }
 0x2c9   :  { %5759 = vpow2.f32 %v2125_v58  ;;  %v5527_v58 = vld [vmem:[%s7605_s8 + $0x348] ss:$28 sps:$4 sm:$0xff]  }
 0x2d1   :  { %v5758_v61 = vpop.eup %5757 }
 0x2d2   :  { %v2129_v62 = vmul.f32 %v5758_v61, %v2127_v59  ;;  %v5530_v59 = vld [vmem:[%s7605_s8 + $0x350] ss:$28 sps:$4 sm:$0xff]  }
 0x2d3   :  { %v5760_v63 = vpop.eup %5759  ;;  %4008 = vmatpush1.bf16.msra.mxu0 %v5530_v59  ;;  %v5538_v61 = vld [vmem:[%s7605_s8 + $0x38c] ss:$28 sps:$4 sm:$0xff]  }
 0x2d4   :  { %v2130_v0 = vmul.f32 %v5760_v63, %v2128_v60  ;;  %v2131_v1 = vadd.f32 %v4932_v43, %v2129_v62  ;;  %v5511_v43 = vld [vmem:[%s7605_s8 + $0x2a4] ss:$28 sps:$4 sm:$0xff]   ;;  %4020 = vmatprep.subr.bf16.mxu0 %v5538_v61  ;;  %v5578_v59 = vld [vmem:[%s7605_s8 + $0x510] ss:$28 sps:$4 sm:$0xff]  }
 0x2d5   :  { %v5535_v60 = vld [vmem:[%s7605_s8 + $0x384] ss:$28 sps:$4 sm:$0xff]  }
 0x2d6   :  { %v2132_v3 = vadd.f32 %v4934_v47, %v2130_v0  ;;  %v5523_v47 = vld [vmem:[%s7605_s8 + $0x314] ss:$28 sps:$4 sm:$0xff]   ;;  %v7029_v62 = vld [vmem:[%s7609_s7] sm:$0xf] }
 0x2d7   :  { %v2171_v63 = vrot.slane %v7029_v62, %v6606_v51  ;;  %v2175_v0 = vrot.slane %v7029_v62, %v6615_v54 }
 0x2d8   :  { %v2133_v5 = vpack.c.bf16 %v2132_v3, %v2131_v1 }
 0x2da   :  { %2381 = vmatmul.mubr.bf16.vlgmr.msra.gmra.mrb[4].mxu1 %v2133_v5 }
 0x2db   :  { %2392 = vmatpush1.bf16.msra.mxu1 %v5413_v2  ;;  %2423 = vmatprep.mubr.bf16.mxu1 %v5817_v11  ;;  %v5427_v11 = vld [vmem:[%s7603_s6 + $0x8c] ss:$16 sps:$4 sm:$0xff]  }
 0x2dc   :  { %2393 = vmatprep.subr.bf16.mxu1 %v5418_v4 }
 0x2df   :  { %2394 = vmatpush1.bf16.msra.mxu1 %v5416_v6 }
 0x2e0   :  { %2395 = vmatprep.subr.bf16.mxu1 %v5421_v7 }
 0x2e3   :  { %2396 = vmatpush1.bf16.msra.mxu1 %v5419_v8 }
 0x2e4   :  { %2397 = vmatprep.subr.bf16.mxu1 %v5424_v9 }
 0x2e7   :  { %2398 = vmatpush1.bf16.msra.mxu1 %v5422_v10 }
 0x2e8   :  { %2399 = vmatprep.subr.bf16.mxu1 %v5427_v11 }
 0x2eb   :  { %2400 = vmatpush1.bf16.msra.mxu1 %v5425_v12 }
 0x2ec   :  { %2401 = vmatprep.subr.bf16.mxu1 %v5430_v13 }
 0x2ef   :  { %2402 = vmatpush1.bf16.msra.mxu1 %v5428_v14 }
 0x2f0   :  { %2403 = vmatprep.subr.bf16.mxu1 %v5433_v15  ;;  %v5533_v15 = vld [vmem:[%s7605_s8 + $0x380] ss:$28 sps:$4 sm:$0xff]  }
 0x2f3   :  { %2404 = vmatpush1.bf16.msra.mxu1 %v5431_v16  ;;  %v5536_v16 = vld [vmem:[%s7605_s8 + $0x388] ss:$28 sps:$4 sm:$0xff]  }
 0x2f4   :  { %2405 = vmatprep.subr.bf16.mxu1 %v5436_v17  ;;  %v5541_v17 = vld [vmem:[%s7605_s8 + $0x3bc] ss:$28 sps:$4 sm:$0xff]  }
 0x2f7   :  { %2406 = vmatpush1.bf16.msra.mxu1 %v5434_v18  ;;  %v5544_v18 = vld [vmem:[%s7605_s8 + $0x3c4] ss:$28 sps:$4 sm:$0xff]  }
 0x2f8   :  { %3891 = vmatprep.subr.bf16.mxu1 %v5439_v19  ;;  %v5539_v19 = vld [vmem:[%s7605_s8 + $0x3b8] ss:$28 sps:$4 sm:$0xff]  }
 0x2fa   :  { %2424 = vmatmul.mubr.bf16.vlgmr.msra.gmra.mrb[8].mxu1 %v2133_v5 }
 0x2fb   :  { %3892 = vmatpush1.bf16.msra.mxu1 %v5437_v20  ;;  %v5542_v20 = vld [vmem:[%s7605_s8 + $0x3c0] ss:$28 sps:$4 sm:$0xff]  }
 0x2fc   :  { %3893 = vmatprep.subr.bf16.mxu1 %v5445_v21  ;;  %v5547_v21 = vld [vmem:[%s7605_s8 + $0x3f4] ss:$28 sps:$4 sm:$0xff]  }
 0x2ff   :  { %3894 = vmatpush1.bf16.msra.mxu1 %v5443_v22  ;;  %v5550_v22 = vld [vmem:[%s7605_s8 + $0x3fc] ss:$28 sps:$4 sm:$0xff]  }
 0x300   :  { %3895 = vmatprep.subr.bf16.mxu1 %v5451_v23  ;;  %v5545_v23 = vld [vmem:[%s7605_s8 + $0x3f0] ss:$28 sps:$4 sm:$0xff]  }
 0x303   :  { %3896 = vmatpush1.bf16.msra.mxu1 %v5449_v24  ;;  %v5548_v24 = vld [vmem:[%s7605_s8 + $0x3f8] ss:$28 sps:$4 sm:$0xff]  }
 0x304   :  { %3897 = vmatprep.subr.bf16.mxu1 %v5457_v25  ;;  %v5553_v25 = vld [vmem:[%s7605_s8 + $0x42c] ss:$28 sps:$4 sm:$0xff]  }
 0x307   :  { %3898 = vmatpush1.bf16.msra.mxu1 %v5455_v26  ;;  %v5556_v26 = vld [vmem:[%s7605_s8 + $0x434] ss:$28 sps:$4 sm:$0xff]  }
 0x308   :  { %3899 = vmatprep.subr.bf16.mxu1 %v5463_v27  ;;  %v5551_v27 = vld [vmem:[%s7605_s8 + $0x428] ss:$28 sps:$4 sm:$0xff]  }
 0x30b   :  { %3900 = vmatpush1.bf16.msra.mxu1 %v5461_v28  ;;  %v5554_v28 = vld [vmem:[%s7605_s8 + $0x430] ss:$28 sps:$4 sm:$0xff]  }
 0x30c   :  { %3901 = vmatprep.subr.bf16.mxu1 %v5469_v29  ;;  %v5559_v29 = vld [vmem:[%s7605_s8 + $0x464] ss:$28 sps:$4 sm:$0xff]  }
 0x30f   :  { %3902 = vmatpush1.bf16.msra.mxu1 %v5467_v30  ;;  %v5562_v30 = vld [vmem:[%s7605_s8 + $0x46c] ss:$28 sps:$4 sm:$0xff]  }
 0x310   :  { %3903 = vmatprep.subr.bf16.mxu1 %v5475_v31  ;;  %v5557_v31 = vld [vmem:[%s7605_s8 + $0x460] ss:$28 sps:$4 sm:$0xff]  }
 0x313   :  { %3904 = vmatpush1.bf16.msra.mxu1 %v5473_v32  ;;  %v5560_v32 = vld [vmem:[%s7605_s8 + $0x468] ss:$28 sps:$4 sm:$0xff]  }
 0x314   :  { %3905 = vmatprep.subr.bf16.mxu1 %v5481_v33  ;;  %v5565_v33 = vld [vmem:[%s7605_s8 + $0x49c] ss:$28 sps:$4 sm:$0xff]  }
 0x317   :  { %3906 = vmatpush1.bf16.msra.mxu1 %v5479_v34  ;;  %v5568_v34 = vld [vmem:[%s7605_s8 + $0x4a4] ss:$28 sps:$4 sm:$0xff]  }
 0x318   :  { %3907 = vmatprep.subr.bf16.mxu1 %v5487_v35  ;;  %v5563_v35 = vld [vmem:[%s7605_s8 + $0x498] ss:$28 sps:$4 sm:$0xff]  }
 0x31b   :  { %3908 = vmatpush1.bf16.msra.mxu1 %v5485_v36  ;;  %v5566_v36 = vld [vmem:[%s7605_s8 + $0x4a0] ss:$28 sps:$4 sm:$0xff]  }
 0x31c   :  { %3909 = vmatprep.subr.bf16.mxu1 %v5493_v37  ;;  %v2179_v37 = vrot.slane %v7029_v62, %v6609_v52 }
 0x31f   :  { %3910 = vmatpush1.bf16.msra.mxu1 %v5491_v38  ;;  %v5571_v38 = vld [vmem:[%s7605_s8 + $0x4d4] ss:$28 sps:$4 sm:$0xff]  }
 0x320   :  { %3911 = vmatprep.subr.bf16.mxu1 %v5499_v39  ;;  %v5574_v39 = vld [vmem:[%s7605_s8 + $0x4dc] ss:$28 sps:$4 sm:$0xff]  }
 0x323   :  { %3912 = vmatpush1.bf16.msra.mxu1 %v5497_v40  ;;  %v2183_v40 = vrot.slane %v7029_v62, %v6618_v55  ;;  %v5583_v62 = vld [vmem:[%s7605_s8 + $0x544] ss:$28 sps:$4 sm:$0xff]  }
 0x324   :  { %3913 = vmatprep.subr.bf16.mxu1 %v5505_v41 }
 0x327   :  { %3914 = vmatpush1.bf16.msra.mxu1 %v5503_v42  ;;  %v5569_v42 = vld [vmem:[%s7605_s8 + $0x4d0] ss:$28 sps:$4 sm:$0xff]  }
 0x328   :  { %3915 = vmatprep.subr.bf16.mxu1 %v5511_v43  ;;  %v5572_v43 = vld [vmem:[%s7605_s8 + $0x4d8] ss:$28 sps:$4 sm:$0xff]  }
 0x32b   :  { %3916 = vmatpush1.bf16.msra.mxu1 %v5509_v44 }
 0x32c   :  { %3917 = vmatprep.subr.bf16.mxu1 %v5517_v45 }
 0x32f   :  { %3918 = vmatpush1.bf16.msra.mxu1 %v5515_v46  ;;  %v5577_v46 = vld [vmem:[%s7605_s8 + $0x50c] ss:$28 sps:$4 sm:$0xff]  }
 0x330   :  { %3919 = vmatprep.subr.bf16.mxu1 %v5523_v47  ;;  %v5580_v47 = vld [vmem:[%s7605_s8 + $0x514] ss:$28 sps:$4 sm:$0xff]  }
 0x333   :  { %3920 = vmatpush1.bf16.msra.mxu1 %v5521_v49 }
 0x334   :  { %3921 = vmatprep.subr.bf16.mxu1 %v5529_v56 }
 0x337   :  { %3922 = vmatpush1.bf16.msra.mxu1 %v5527_v58  ;;  %v5575_v58 = vld [vmem:[%s7605_s8 + $0x508] ss:$28 sps:$4 sm:$0xff]  }
 0x338   :  { %3934 = vmatprep.subr.bf16.mxu1 %v5535_v60 }
 0x3ad   :  { %v2382_v1 = vpop.f32.mrb[4].mxu1 }
 0x3ae   :  { %v2383_v2 = vadd.f32 %v2382_v1, %v2171_v63  ;;  %v2384_v3 = vpop.f32.mrb[5].mxu1 }
 0x3af   :  { %v2385_v4 = vadd.f32 %v2384_v3, %v2175_v0  ;;  %v2386_v5 = vpop.f32.mrb[6].mxu1 }
 0x3b0   :  { %v2387_v6 = vadd.f32 %v2386_v5, %v2171_v63  ;;  %v2388_v7 = vpop.f32.mrb[7].mxu1  ;;  %v2434_v9 = vmax.f32 %v2383_v2, 0.0  ;;  %v5586_v63 = vld [vmem:[%s7605_s8 + $0x54c] ss:$28 sps:$4 sm:$0xff]  }
 0x3b1   :  { %v2389_v8 = vadd.f32 %v2388_v7, %v2175_v0  ;;  %v2435_v11 = vmax.f32 %v2385_v4, 0.0  ;;  %v5581_v4 = vld [vmem:[%s7605_s8 + $0x540] ss:$28 sps:$4 sm:$0xff]   ;;  %v5584_v5 = vld [vmem:[%s7605_s8 + $0x548] ss:$28 sps:$4 sm:$0xff]  }
 0x3b2   :  { %v2438_v10 = vmax.f32 %v2387_v6, 0.0  ;;  %v5589_v6 = vld [vmem:[%s7605_s8 + $0x57c] ss:$28 sps:$4 sm:$0xff]   ;;  %v5592_v7 = vld [vmem:[%s7605_s8 + $0x584] ss:$28 sps:$4 sm:$0xff]  }
 0x3b3   :  { %v2439_v12 = vmax.f32 %v2389_v8, 0.0  ;;  %v5587_v8 = vld [vmem:[%s7605_s8 + $0x578] ss:$28 sps:$4 sm:$0xff]  }
 0x3b4   :  { %v7035_v13 = vpack.c.bf16 %v2438_v10, %v2434_v9  ;;  %v5590_v9 = vld [vmem:[%s7605_s8 + $0x580] ss:$28 sps:$4 sm:$0xff]   ;;  %v5595_v10 = vld [vmem:[%s7605_s8 + $0x5b4] ss:$28 sps:$4 sm:$0xff]  }
 0x3b5   :  { %v7037_v14 = vpack.c.bf16 %v2439_v12, %v2435_v11  ;;  %v5598_v11 = vld [vmem:[%s7605_s8 + $0x5bc] ss:$28 sps:$4 sm:$0xff]   ;;  %v5593_v12 = vld [vmem:[%s7605_s8 + $0x5b0] ss:$28 sps:$4 sm:$0xff]  }
 0x3b7   :  { %3923 = vmatprep.mubr.bf16.mxu1 %v7037_v14  ;;  %4009 = vmatprep.mubr.bf16.mxu0 %v7037_v14 }
 0x3b8   :  { %3924 = vmatmul.mubr.bf16.vlgmr.msra.gmra.mrb[12].mxu1 %v7035_v13  ;;  %4010 = vmatmul.mubr.bf16.vlgmr.msra.gmra.mrb[8].mxu0 %v7035_v13 }
 0x3b9   :  { %3935 = vmatpush1.bf16.msra.mxu1 %v5533_v15  ;;  %4021 = vmatpush1.bf16.msra.mxu0 %v5536_v16  ;;  %v5596_v15 = vld [vmem:[%s7605_s8 + $0x5b8] ss:$28 sps:$4 sm:$0xff]   ;;  %v5601_v16 = vld [vmem:[%s7605_s8 + $0x5ec] ss:$28 sps:$4 sm:$0xff]  }
 0x3ba   :  { %3936 = vmatprep.subr.bf16.mxu1 %v5541_v17  ;;  %4022 = vmatprep.subr.bf16.mxu0 %v5544_v18  ;;  %v5604_v17 = vld [vmem:[%s7605_s8 + $0x5f4] ss:$28 sps:$4 sm:$0xff]   ;;  %v5599_v18 = vld [vmem:[%s7605_s8 + $0x5e8] ss:$28 sps:$4 sm:$0xff]  }
 0x3bd   :  { %3937 = vmatpush1.bf16.msra.mxu1 %v5539_v19  ;;  %4023 = vmatpush1.bf16.msra.mxu0 %v5542_v20  ;;  %v5602_v19 = vld [vmem:[%s7605_s8 + $0x5f0] ss:$28 sps:$4 sm:$0xff]   ;;  %v5607_v20 = vld [vmem:[%s7605_s8 + $0x624] ss:$28 sps:$4 sm:$0xff]  }
 0x3be   :  { %3938 = vmatprep.subr.bf16.mxu1 %v5547_v21  ;;  %4024 = vmatprep.subr.bf16.mxu0 %v5550_v22  ;;  %v5610_v21 = vld [vmem:[%s7605_s8 + $0x62c] ss:$28 sps:$4 sm:$0xff]   ;;  %v5605_v22 = vld [vmem:[%s7605_s8 + $0x620] ss:$28 sps:$4 sm:$0xff]  }
 0x3c1   :  { %3939 = vmatpush1.bf16.msra.mxu1 %v5545_v23  ;;  %4025 = vmatpush1.bf16.msra.mxu0 %v5548_v24  ;;  %v5608_v23 = vld [vmem:[%s7605_s8 + $0x628] ss:$28 sps:$4 sm:$0xff]   ;;  %v5613_v24 = vld [vmem:[%s7605_s8 + $0x65c] ss:$28 sps:$4 sm:$0xff]  }
 0x3c2   :  { %3940 = vmatprep.subr.bf16.mxu1 %v5553_v25  ;;  %4026 = vmatprep.subr.bf16.mxu0 %v5556_v26  ;;  %v5616_v25 = vld [vmem:[%s7605_s8 + $0x664] ss:$28 sps:$4 sm:$0xff]   ;;  %v5611_v26 = vld [vmem:[%s7605_s8 + $0x658] ss:$28 sps:$4 sm:$0xff]  }
 0x3c5   :  { %3941 = vmatpush1.bf16.msra.mxu1 %v5551_v27  ;;  %4027 = vmatpush1.bf16.msra.mxu0 %v5554_v28  ;;  %v5614_v27 = vld [vmem:[%s7605_s8 + $0x660] ss:$28 sps:$4 sm:$0xff]   ;;  %v5619_v28 = vld [vmem:[%s7605_s8 + $0x694] ss:$28 sps:$4 sm:$0xff]  }
 0x3c6   :  { %3942 = vmatprep.subr.bf16.mxu1 %v5559_v29  ;;  %4028 = vmatprep.subr.bf16.mxu0 %v5562_v30  ;;  %v5622_v29 = vld [vmem:[%s7605_s8 + $0x69c] ss:$28 sps:$4 sm:$0xff]   ;;  %v5617_v30 = vld [vmem:[%s7605_s8 + $0x690] ss:$28 sps:$4 sm:$0xff]  }
 0x3c9   :  { %3943 = vmatpush1.bf16.msra.mxu1 %v5557_v31  ;;  %4029 = vmatpush1.bf16.msra.mxu0 %v5560_v32  ;;  %v5620_v31 = vld [vmem:[%s7605_s8 + $0x698] ss:$28 sps:$4 sm:$0xff]   ;;  %v5625_v32 = vld [vmem:[%s7605_s8 + $0x6cc] ss:$28 sps:$4 sm:$0xff]  }
 0x3ca   :  { %3944 = vmatprep.subr.bf16.mxu1 %v5565_v33  ;;  %4030 = vmatprep.subr.bf16.mxu0 %v5568_v34  ;;  %v5628_v33 = vld [vmem:[%s7605_s8 + $0x6d4] ss:$28 sps:$4 sm:$0xff]   ;;  %v5623_v34 = vld [vmem:[%s7605_s8 + $0x6c8] ss:$28 sps:$4 sm:$0xff]  }
 0x3cd   :  { %v2425_v41 = vpop.f32.mrb[8].mxu1  ;;  %3945 = vmatpush1.bf16.msra.mxu1 %v5563_v35  ;;  %4031 = vmatpush1.bf16.msra.mxu0 %v5566_v36  ;;  %v5626_v35 = vld [vmem:[%s7605_s8 + $0x6d0] ss:$28 sps:$4 sm:$0xff]  }
 0x3ce   :  { %v2426_v44 = vadd.f32 %v2425_v41, %v2179_v37  ;;  %v2427_v45 = vpop.f32.mrb[9].mxu1  ;;  %3946 = vmatprep.subr.bf16.mxu1 %v5571_v38  ;;  %4032 = vmatprep.subr.bf16.mxu0 %v5574_v39  ;;  %v5631_v36 = vld [vmem:[%s7605_s8 + $0x14] ss:$28 sps:$4 sm:$0xff]  }
 0x3cf   :  { %v2428_v48 = vadd.f32 %v2427_v45, %v2183_v40  ;;  %v2429_v49 = vpop.f32.mrb[10].mxu1  ;;  %v5629_v38 = vld [vmem:[%s7605_s8 + $0x10] ss:$28 sps:$4 sm:$0xff]   ;;  %v5633_v39 = vld [vmem:[%s7605_s8 + $0x18] ss:$28 sps:$4 sm:$0xff]  }
 0x3d0   :  { %v2430_v53 = vadd.f32 %v2429_v49, %v2179_v37  ;;  %v2431_v56 = vpop.f32.mrb[11].mxu1  ;;  %v2436_v60 = vmax.f32 %v2426_v44, 0.0  ;;  %v5632_v37 = vld [vmem:[%s7605_s8 + $0x1d8] ss:$28 sps:$4 sm:$0xff]   ;;  %v5637_v41 = vld [vmem:[%s7605_s8 + $0x210] ss:$28 sps:$4 sm:$0xff]  }
 0x3d1   :  { %v2432_v57 = vadd.f32 %v2431_v56, %v2183_v40  ;;  %3947 = vmatpush1.bf16.msra.mxu1 %v5569_v42  ;;  %4033 = vmatpush1.bf16.msra.mxu0 %v5572_v43  ;;  %v2437_v0 = vmax.f32 %v2428_v48, 0.0  ;;  %v5636_v40 = vld [vmem:[%s7605_s8 + $0x4c] ss:$28 sps:$4 sm:$0xff]   ;;  %v5641_v44 = vld [vmem:[%s7605_s8 + $0x84] ss:$28 sps:$4 sm:$0xff]  }
 0x3d2   :  { %v2440_v61 = vmax.f32 %v2430_v53, 0.0  ;;  %3948 = vmatprep.subr.bf16.mxu1 %v5577_v46  ;;  %4034 = vmatprep.subr.bf16.mxu0 %v5580_v47  ;;  %v5634_v42 = vld [vmem:[%s7605_s8 + $0x48] ss:$28 sps:$4 sm:$0xff]   ;;  %v5638_v43 = vld [vmem:[%s7605_s8 + $0x50] ss:$28 sps:$4 sm:$0xff]  }
 0x3d3   :  { %v2441_v1 = vmax.f32 %v2432_v57, 0.0  ;;  %v5642_v45 = vld [vmem:[%s7605_s8 + $0x248] ss:$28 sps:$4 sm:$0xff]   ;;  %v5639_v46 = vld [vmem:[%s7605_s8 + $0x80] ss:$28 sps:$4 sm:$0xff]  }
 0x3d4   :  { %v7143_v2 = vpack.c.bf16 %v2440_v61, %v2436_v60  ;;  %v5646_v47 = vld [vmem:[%s7605_s8 + $0xbc] ss:$28 sps:$4 sm:$0xff]   ;;  %v5651_v56 = vld [vmem:[%s7605_s8 + $0xf4] ss:$28 sps:$4 sm:$0xff]   ;;  %v5656_v60 = vld [vmem:[%s7605_s8 + $0x12c] ss:$28 sps:$4 sm:$0xff]  }
 0x3d5   :  { %v7145_v3 = vpack.c.bf16 %v2441_v1, %v2437_v0  ;;  %3949 = vmatpush1.bf16.msra.mxu1 %v5575_v58  ;;  %4035 = vmatpush1.bf16.msra.mxu0 %v5578_v59  ;;  %v5647_v48 = vld [vmem:[%s7605_s8 + $0x280] ss:$28 sps:$4 sm:$0xff]   ;;  %v5644_v49 = vld [vmem:[%s7605_s8 + $0xb8] ss:$28 sps:$4 sm:$0xff]   ;;  %v5649_v58 = vld [vmem:[%s7605_s8 + $0xf0] ss:$28 sps:$4 sm:$0xff]  }
 0x3d6   :  { %3950 = vmatprep.subr.bf16.mxu1 %v5583_v62  ;;  %4036 = vmatprep.subr.bf16.mxu0 %v5586_v63  ;;  %v5648_v53 = vld [vmem:[%s7605_s8 + $0xc0] ss:$28 sps:$4 sm:$0xff]   ;;  %v5652_v57 = vld [vmem:[%s7605_s8 + $0x2b8] ss:$28 sps:$4 sm:$0xff]   ;;  %v5657_v61 = vld [vmem:[%s7605_s8 + $0x2f0] ss:$28 sps:$4 sm:$0xff]  }
 0x3d7   :  { %3966 = vmatprep.mubr.bf16.mxu1 %v7145_v3  ;;  %4052 = vmatprep.mubr.bf16.mxu0 %v7145_v3  ;;  %v5653_v59 = vld [vmem:[%s7605_s8 + $0xf8] ss:$28 sps:$4 sm:$0xff]   ;;  %v5654_v62 = vld [vmem:[%s7605_s8 + $0x128] ss:$28 sps:$4 sm:$0xff]   ;;  %v5658_v63 = vld [vmem:[%s7605_s8 + $0x130] ss:$28 sps:$4 sm:$0xff]  }
 0x3d8   :  { %v5661_v0 = vld [vmem:[%s7605_s8 + $0x164] ss:$28 sps:$4 sm:$0xff]  }
 0x3d9   :  { %3951 = vmatpush1.bf16.msra.mxu1 %v5581_v4  ;;  %4037 = vmatpush1.bf16.msra.mxu0 %v5584_v5  ;;  %v5662_v1 = vld [vmem:[%s7605_s8 + $0x328] ss:$28 sps:$4 sm:$0xff]   ;;  %v5659_v4 = vld [vmem:[%s7605_s8 + $0x160] ss:$28 sps:$4 sm:$0xff]  }
 0x3da   :  { %3952 = vmatprep.subr.bf16.mxu1 %v5589_v6  ;;  %4038 = vmatprep.subr.bf16.mxu0 %v5592_v7  ;;  %v5663_v5 = vld [vmem:[%s7605_s8 + $0x168] ss:$28 sps:$4 sm:$0xff]   ;;  %v5666_v6 = vld [vmem:[%s7605_s8 + $0x19c] ss:$28 sps:$4 sm:$0xff]  }
 0x3db   :  { %v5667_v7 = vld [vmem:[%s7605_s8 + $0x360] ss:$28 sps:$4 sm:$0xff]  }
 0x3dd   :  { %3953 = vmatpush1.bf16.msra.mxu1 %v5587_v8  ;;  %4039 = vmatpush1.bf16.msra.mxu0 %v5590_v9  ;;  %v5664_v8 = vld [vmem:[%s7605_s8 + $0x198] ss:$28 sps:$4 sm:$0xff]   ;;  %v5668_v9 = vld [vmem:[%s7605_s8 + $0x1a0] ss:$28 sps:$4 sm:$0xff]  }
 0x3de   :  { %3954 = vmatprep.subr.bf16.mxu1 %v5595_v10  ;;  %4040 = vmatprep.subr.bf16.mxu0 %v5598_v11  ;;  %v5671_v10 = vld [vmem:[%s7605_s8 + $0x1d4] ss:$28 sps:$4 sm:$0xff]  }
 0x3df   :  { %v5672_v11 = vld [vmem:[%s7605_s8 + $0x558] ss:$28 sps:$4 sm:$0xff]  }
 0x3e1   :  { %3955 = vmatpush1.bf16.msra.mxu1 %v5593_v12  ;;  %4041 = vmatpush1.bf16.msra.mxu0 %v5596_v15  ;;  %v5669_v12 = vld [vmem:[%s7605_s8 + $0x1d0] ss:$28 sps:$4 sm:$0xff]   ;;  %v5673_v15 = vld [vmem:[%s7605_s8 + $0x398] ss:$28 sps:$4 sm:$0xff]  }
 0x3e2   :  { %3956 = vmatprep.subr.bf16.mxu1 %v5601_v16  ;;  %4042 = vmatprep.subr.bf16.mxu0 %v5604_v17  ;;  %v5676_v16 = vld [vmem:[%s7605_s8 + $0x20c] ss:$28 sps:$4 sm:$0xff]  }
 0x3e3   :  { %v5677_v17 = vld [vmem:[%s7605_s8 + $0x590] ss:$28 sps:$4 sm:$0xff]  }
 0x3e5   :  { %3957 = vmatpush1.bf16.msra.mxu1 %v5599_v18  ;;  %4043 = vmatpush1.bf16.msra.mxu0 %v5602_v19  ;;  %v5674_v18 = vld [vmem:[%s7605_s8 + $0x208] ss:$28 sps:$4 sm:$0xff]   ;;  %v5678_v19 = vld [vmem:[%s7605_s8 + $0x3d0] ss:$28 sps:$4 sm:$0xff]  }
 0x3e6   :  { %3958 = vmatprep.subr.bf16.mxu1 %v5607_v20  ;;  %4044 = vmatprep.subr.bf16.mxu0 %v5610_v21  ;;  %v5681_v20 = vld [vmem:[%s7605_s8 + $0x244] ss:$28 sps:$4 sm:$0xff]  }
 0x3e7   :  { %v5682_v21 = vld [vmem:[%s7605_s8 + $0x5c8] ss:$28 sps:$4 sm:$0xff]  }
 0x3e9   :  { %3959 = vmatpush1.bf16.msra.mxu1 %v5605_v22  ;;  %4045 = vmatpush1.bf16.msra.mxu0 %v5608_v23  ;;  %v5679_v22 = vld [vmem:[%s7605_s8 + $0x240] ss:$28 sps:$4 sm:$0xff]   ;;  %v5683_v23 = vld [vmem:[%s7605_s8 + $0x408] ss:$28 sps:$4 sm:$0xff]  }
 0x3ea   :  { %3960 = vmatprep.subr.bf16.mxu1 %v5613_v24  ;;  %4046 = vmatprep.subr.bf16.mxu0 %v5616_v25  ;;  %v5686_v24 = vld [vmem:[%s7605_s8 + $0x27c] ss:$28 sps:$4 sm:$0xff]  }
 0x3eb   :  { %v5687_v25 = vld [vmem:[%s7605_s8 + $0x600] ss:$28 sps:$4 sm:$0xff]  }
 0x3ed   :  { %3961 = vmatpush1.bf16.msra.mxu1 %v5611_v26  ;;  %4047 = vmatpush1.bf16.msra.mxu0 %v5614_v27  ;;  %v5684_v26 = vld [vmem:[%s7605_s8 + $0x278] ss:$28 sps:$4 sm:$0xff]   ;;  %v5688_v27 = vld [vmem:[%s7605_s8 + $0x440] ss:$28 sps:$4 sm:$0xff]  }
 0x3ee   :  { %3962 = vmatprep.subr.bf16.mxu1 %v5619_v28  ;;  %4048 = vmatprep.subr.bf16.mxu0 %v5622_v29  ;;  %v5691_v28 = vld [vmem:[%s7605_s8 + $0x2b4] ss:$28 sps:$4 sm:$0xff]  }
 0x3ef   :  { %v5692_v29 = vld [vmem:[%s7605_s8 + $0x638] ss:$28 sps:$4 sm:$0xff]  }
 0x3f1   :  { %3963 = vmatpush1.bf16.msra.mxu1 %v5617_v30  ;;  %4049 = vmatpush1.bf16.msra.mxu0 %v5620_v31  ;;  %v5689_v30 = vld [vmem:[%s7605_s8 + $0x2b0] ss:$28 sps:$4 sm:$0xff]   ;;  %v5693_v31 = vld [vmem:[%s7605_s8 + $0x478] ss:$28 sps:$4 sm:$0xff]  }
 0x3f2   :  { %3964 = vmatprep.subr.bf16.mxu1 %v5625_v32  ;;  %4050 = vmatprep.subr.bf16.mxu0 %v5628_v33  ;;  %v5696_v32 = vld [vmem:[%s7605_s8 + $0x2ec] ss:$28 sps:$4 sm:$0xff]  }
 0x3f3   :  { %v5697_v33 = vld [vmem:[%s7605_s8 + $0x670] ss:$28 sps:$4 sm:$0xff]  }
 0x3f5   :  { %3965 = vmatpush1.bf16.msra.mxu1 %v5623_v34  ;;  %4051 = vmatpush1.bf16.msra.mxu0 %v5626_v35  ;;  %v5694_v34 = vld [vmem:[%s7605_s8 + $0x2e8] ss:$28 sps:$4 sm:$0xff]   ;;  %v5698_v35 = vld [vmem:[%s7605_s8 + $0x4b0] ss:$28 sps:$4 sm:$0xff]  }
 0x3f6   :  { %4063 = vmatprep.subr.bf16.mxu1 %v5631_v36  ;;  %4880 = vmatprep.subr.bf16.mxu0 %v5632_v37  ;;  %v5701_v36 = vld [vmem:[%s7605_s8 + $0x324] ss:$28 sps:$4 sm:$0xff]  }
 0x3f7   :  { %v5702_v37 = vld [vmem:[%s7605_s8 + $0x6a8] ss:$28 sps:$4 sm:$0xff]  }
 0x3f8   :  { %3967 = vmatmul.mubr.bf16.vlgmr.msra.gmra.mrb[12].mxu1 %v7143_v2  ;;  %4053 = vmatmul.mubr.bf16.vlgmr.msra.gmra.mrb[8].mxu0 %v7143_v2 }
 0x3f9   :  { %4064 = vmatpush1.bf16.msra.mxu1 %v5629_v38  ;;  %4095 = vmatprep.mubr.bf16.mxu1 %v7037_v14  ;;  %v5699_v38 = vld [vmem:[%s7605_s8 + $0x320] ss:$28 sps:$4 sm:$0xff]  }
 0x3fa   :  { %4881 = vmatpush3.bf16.msra.mxu0 %v5633_v39  ;;  %4181 = vmatprep.mubr.bf16.mxu0 %v7037_v14  ;;  %v5643_v14 = vld [vmem:[%s7605_s8 + $0x88] ss:$28 sps:$4 sm:$0xff]  }
 0x3fb   :  { %4065 = vmatprep.subr.bf16.mxu1 %v5636_v40  ;;  %4882 = vmatprep.subr.bf16.mxu0 %v5637_v41  ;;  %v5703_v39 = vld [vmem:[%s7605_s8 + $0x4e8] ss:$28 sps:$4 sm:$0xff]   ;;  %v5706_v40 = vld [vmem:[%s7605_s8 + $0x35c] ss:$28 sps:$4 sm:$0xff]  }
 0x3fc   :  { %v5707_v41 = vld [vmem:[%s7605_s8 + $0x6e0] ss:$28 sps:$4 sm:$0xff]  }
 0x3fd   :  { %4066 = vmatpush1.bf16.msra.mxu1 %v5634_v42  ;;  %v5704_v42 = vld [vmem:[%s7605_s8 + $0x358] ss:$28 sps:$4 sm:$0xff]  }
 0x3fe   :  { %4883 = vmatpush3.bf16.msra.mxu0 %v5638_v43  ;;  %4067 = vmatprep.subr.bf16.mxu1 %v5641_v44  ;;  %v5708_v43 = vld [vmem:[%s7605_s8 + $0x520] ss:$28 sps:$4 sm:$0xff]   ;;  %v5711_v44 = vld [vmem:[%s7605_s8 + $0x394] ss:$28 sps:$4 sm:$0xff]  }
 0x3ff   :  { %4884 = vmatprep.subr.bf16.mxu0 %v5642_v45  ;;  %v5709_v45 = vld [vmem:[%s7605_s8 + $0x390] ss:$28 sps:$4 sm:$0xff]  }
 0x401   :  { %4068 = vmatpush1.bf16.msra.mxu1 %v5639_v46  ;;  %v5714_v46 = vld [vmem:[%s7605_s8 + $0x3cc] ss:$28 sps:$4 sm:$0xff]  }
 0x402   :  { %4885 = vmatpush3.bf16.msra.mxu0 %v5643_v14  ;;  %4069 = vmatprep.subr.bf16.mxu1 %v5646_v47  ;;  %v5712_v14 = vld [vmem:[%s7605_s8 + $0x3c8] ss:$28 sps:$4 sm:$0xff]  }
 0x403   :  { %4886 = vmatprep.subr.bf16.mxu0 %v5647_v48  ;;  %v5717_v47 = vld [vmem:[%s7605_s8 + $0x404] ss:$28 sps:$4 sm:$0xff]  }
 0x404   :  { %v5715_v48 = vld [vmem:[%s7605_s8 + $0x400] ss:$28 sps:$4 sm:$0xff]  }
 0x405   :  { %4070 = vmatpush1.bf16.msra.mxu1 %v5644_v49  ;;  %v5723_v49 = vld [vmem:[%s7605_s8 + $0x474] ss:$28 sps:$4 sm:$0xff]  }
 0x406   :  { %4887 = vmatpush3.bf16.msra.mxu0 %v5648_v53  ;;  %4071 = vmatprep.subr.bf16.mxu1 %v5651_v56  ;;  %v5721_v53 = vld [vmem:[%s7605_s8 + $0x470] ss:$28 sps:$4 sm:$0xff]  }
 0x407   :  { %4888 = vmatprep.subr.bf16.mxu0 %v5652_v57  ;;  %v5726_v56 = vld [vmem:[%s7605_s8 + $0x4ac] ss:$28 sps:$4 sm:$0xff]  }
 0x408   :  { %v5724_v57 = vld [vmem:[%s7605_s8 + $0x4a8] ss:$28 sps:$4 sm:$0xff]  }
 0x409   :  { %4072 = vmatpush1.bf16.msra.mxu1 %v5649_v58  ;;  %v5729_v58 = vld [vmem:[%s7605_s8 + $0x4e4] ss:$28 sps:$4 sm:$0xff]  }
 0x40a   :  { %4889 = vmatpush3.bf16.msra.mxu0 %v5653_v59  ;;  %4073 = vmatprep.subr.bf16.mxu1 %v5656_v60  ;;  %v5727_v59 = vld [vmem:[%s7605_s8 + $0x4e0] ss:$28 sps:$4 sm:$0xff]  }
 0x40b   :  { %4890 = vmatprep.subr.bf16.mxu0 %v5657_v61  ;;  %v5732_v60 = vld [vmem:[%s7605_s8 + $0x51c] ss:$28 sps:$4 sm:$0xff]  }
 0x40c   :  { %v5730_v61 = vld [vmem:[%s7605_s8 + $0x518] ss:$28 sps:$4 sm:$0xff]  }
 0x40d   :  { %4074 = vmatpush1.bf16.msra.mxu1 %v5654_v62  ;;  %v5735_v62 = vld [vmem:[%s7605_s8 + $0x554] ss:$28 sps:$4 sm:$0xff]  }
 0x40e   :  { %4891 = vmatpush3.bf16.msra.mxu0 %v5658_v63  ;;  %4075 = vmatprep.subr.bf16.mxu1 %v5661_v0  ;;  %v5733_v63 = vld [vmem:[%s7605_s8 + $0x550] ss:$28 sps:$4 sm:$0xff]  }
 0x40f   :  { %4892 = vmatprep.subr.bf16.mxu0 %v5662_v1  ;;  %v5738_v0 = vld [vmem:[%s7605_s8 + $0x58c] ss:$28 sps:$4 sm:$0xff]  }
 0x410   :  { %v5736_v1 = vld [vmem:[%s7605_s8 + $0x588] ss:$28 sps:$4 sm:$0xff]  }
 0x411   :  { %4076 = vmatpush1.bf16.msra.mxu1 %v5659_v4  ;;  %v5741_v4 = vld [vmem:[%s7605_s8 + $0x5c4] ss:$28 sps:$4 sm:$0xff]  }
 0x412   :  { %4893 = vmatpush3.bf16.msra.mxu0 %v5663_v5  ;;  %4077 = vmatprep.subr.bf16.mxu1 %v5666_v6  ;;  %v5739_v5 = vld [vmem:[%s7605_s8 + $0x5c0] ss:$28 sps:$4 sm:$0xff]  }
 0x413   :  { %4894 = vmatprep.subr.bf16.mxu0 %v5667_v7  ;;  %v5744_v6 = vld [vmem:[%s7605_s8 + $0x5fc] ss:$28 sps:$4 sm:$0xff]  }
 0x414   :  { %v5742_v7 = vld [vmem:[%s7605_s8 + $0x5f8] ss:$28 sps:$4 sm:$0xff]  }
 0x415   :  { %4078 = vmatpush1.bf16.msra.mxu1 %v5664_v8  ;;  %v5747_v8 = vld [vmem:[%s7605_s8 + $0x634] ss:$28 sps:$4 sm:$0xff]  }
 0x416   :  { %4895 = vmatpush3.bf16.msra.mxu0 %v5668_v9  ;;  %4079 = vmatprep.subr.bf16.mxu1 %v5671_v10  ;;  %v5745_v9 = vld [vmem:[%s7605_s8 + $0x630] ss:$28 sps:$4 sm:$0xff]  }
 0x417   :  { %4902 = vmatprep.subr.bf16.mxu0 %v5672_v11  ;;  %v5750_v10 = vld [vmem:[%s7605_s8 + $0x66c] ss:$28 sps:$4 sm:$0xff]  }
 0x418   :  { %v5748_v11 = vld [vmem:[%s7605_s8 + $0x668] ss:$28 sps:$4 sm:$0xff]  }
 0x419   :  { %4182 = vmatmul.mubr.bf16.vlgmr.msra.gmra.mrb[12].mxu0 %v7035_v13  ;;  %4080 = vmatpush1.bf16.msra.mxu1 %v5669_v12  ;;  %v5753_v12 = vld [vmem:[%s7605_s8 + $0x6a4] ss:$28 sps:$4 sm:$0xff]  }
 0x41a   :  { %4903 = vmatpush3.bf16.msra.mxu0 %v5673_v15  ;;  %4222 = vmatprep.mubr.bf16.mxu0 %v7145_v3  ;;  %v5751_v15 = vld [vmem:[%s7605_s8 + $0x6a0] ss:$28 sps:$4 sm:$0xff]  }
 0x41b   :  { %4081 = vmatprep.subr.bf16.mxu1 %v5676_v16  ;;  %4904 = vmatprep.subr.bf16.mxu0 %v5677_v17  ;;  %v5756_v16 = vld [vmem:[%s7605_s8 + $0x6dc] ss:$28 sps:$4 sm:$0xff]  }
 0x41c   :  { %v5754_v17 = vld [vmem:[%s7605_s8 + $0x6d8] ss:$28 sps:$4 sm:$0xff]  }
 0x41d   :  { %4082 = vmatpush1.bf16.msra.mxu1 %v5674_v18  ;;  %v7540_v18 = vld [vmem:[%s7610_s9] sm:$0x7f] }
 0x41e   :  { %4905 = vmatpush3.bf16.msra.mxu0 %v5678_v19  ;;  %4083 = vmatprep.subr.bf16.mxu1 %v5681_v20  ;;  %v2707_v19 = vrot.slane %v7540_v18, %v6606_v51  ;;  %v2715_v20 = vrot.slane %v7540_v18, %v6609_v52 }
 0x41f   :  { %4906 = vmatprep.subr.bf16.mxu0 %v5682_v21  ;;  %v2711_v21 = vrot.slane %v7540_v18, %v6615_v54 }
 0x421   :  { %4084 = vmatpush1.bf16.msra.mxu1 %v5679_v22  ;;  %v2719_v22 = vrot.slane %v7540_v18, %v6618_v55 }
 0x422   :  { %4907 = vmatpush3.bf16.msra.mxu0 %v5683_v23  ;;  %4085 = vmatprep.subr.bf16.mxu1 %v5686_v24 }
 0x423   :  { %4908 = vmatprep.subr.bf16.mxu0 %v5687_v25 }
 0x425   :  { %4086 = vmatpush1.bf16.msra.mxu1 %v5684_v26 }
 0x426   :  { %4909 = vmatpush3.bf16.msra.mxu0 %v5688_v27  ;;  %4087 = vmatprep.subr.bf16.mxu1 %v5691_v28 }
 0x427   :  { %4910 = vmatprep.subr.bf16.mxu0 %v5692_v29 }
 0x429   :  { %4088 = vmatpush1.bf16.msra.mxu1 %v5689_v30 }
 0x42a   :  { %4911 = vmatpush3.bf16.msra.mxu0 %v5693_v31  ;;  %4089 = vmatprep.subr.bf16.mxu1 %v5696_v32 }
 0x42b   :  { %4912 = vmatprep.subr.bf16.mxu0 %v5697_v33 }
 0x42d   :  { %4090 = vmatpush1.bf16.msra.mxu1 %v5694_v34 }
 0x42e   :  { %4913 = vmatpush3.bf16.msra.mxu0 %v5698_v35  ;;  %4091 = vmatprep.subr.bf16.mxu1 %v5701_v36 }
 0x42f   :  { %4914 = vmatprep.subr.bf16.mxu0 %v5702_v37 }
 0x431   :  { %4092 = vmatpush1.bf16.msra.mxu1 %v5699_v38 }
 0x432   :  { %4915 = vmatpush3.bf16.msra.mxu0 %v5703_v39  ;;  %4093 = vmatprep.subr.bf16.mxu1 %v5706_v40 }
 0x433   :  { %4916 = vmatprep.subr.bf16.mxu0 %v5707_v41 }
 0x435   :  { %4094 = vmatpush1.bf16.msra.mxu1 %v5704_v42 }
 0x436   :  { %4917 = vmatpush3.bf16.msra.mxu0 %v5708_v43  ;;  %4106 = vmatprep.subr.bf16.mxu1 %v5711_v44 }
 0x438   :  { %4096 = vmatmul.mubr.bf16.vlgmr.msra.gmra.mrb[16].mxu1 %v7035_v13  ;;  %v5720_v13 = vld [vmem:[%s7605_s8 + $0x43c] ss:$28 sps:$4 sm:$0xff]  }
 0x439   :  { %4223 = vmatmul.mubr.bf16.vlgmr.msra.gmra.mrb[16].mxu0 %v7143_v2  ;;  %4107 = vmatpush1.bf16.msra.mxu1 %v5709_v45 }
 0x43a   :  { %4138 = vmatprep.mubr.bf16.mxu1 %v7145_v3  ;;  %4108 = vmatprep.subr.bf16.mxu1 %v5714_v46  ;;  %v5718_v3 = vld [vmem:[%s7605_s8 + $0x438] ss:$28 sps:$4 sm:$0xff]  }
 0x43d   :  { %4109 = vmatpush1.bf16.msra.mxu1 %v5712_v14 }
 0x43e   :  { %4110 = vmatprep.subr.bf16.mxu1 %v5717_v47 }
 0x441   :  { %4111 = vmatpush1.bf16.msra.mxu1 %v5715_v48 }
 0x442   :  { %4112 = vmatprep.subr.bf16.mxu1 %v5720_v13 }
 0x445   :  { %4113 = vmatpush1.bf16.msra.mxu1 %v5718_v3 }
 0x446   :  { %4114 = vmatprep.subr.bf16.mxu1 %v5723_v49 }
 0x449   :  { %4115 = vmatpush1.bf16.msra.mxu1 %v5721_v53 }
 0x44a   :  { %4116 = vmatprep.subr.bf16.mxu1 %v5726_v56 }
 0x44d   :  { %4117 = vmatpush1.bf16.msra.mxu1 %v5724_v57 }
 0x44e   :  { %4118 = vmatprep.subr.bf16.mxu1 %v5729_v58 }
 0x451   :  { %4119 = vmatpush1.bf16.msra.mxu1 %v5727_v59 }
 0x452   :  { %4120 = vmatprep.subr.bf16.mxu1 %v5732_v60 }
 0x455   :  { %4121 = vmatpush1.bf16.msra.mxu1 %v5730_v61 }
 0x456   :  { %4122 = vmatprep.subr.bf16.mxu1 %v5735_v62 }
 0x459   :  { %4123 = vmatpush1.bf16.msra.mxu1 %v5733_v63 }
 0x45a   :  { %4124 = vmatprep.subr.bf16.mxu1 %v5738_v0 }
 0x45d   :  { %4125 = vmatpush1.bf16.msra.mxu1 %v5736_v1 }
 0x45e   :  { %4126 = vmatprep.subr.bf16.mxu1 %v5741_v4 }
 0x461   :  { %4127 = vmatpush1.bf16.msra.mxu1 %v5739_v5 }
 0x462   :  { %4128 = vmatprep.subr.bf16.mxu1 %v5744_v6 }
 0x465   :  { %4129 = vmatpush1.bf16.msra.mxu1 %v5742_v7 }
 0x466   :  { %4130 = vmatprep.subr.bf16.mxu1 %v5747_v8 }
 0x469   :  { %4131 = vmatpush1.bf16.msra.mxu1 %v5745_v9 }
 0x46a   :  { %4132 = vmatprep.subr.bf16.mxu1 %v5750_v10 }
 0x46d   :  { %4133 = vmatpush1.bf16.msra.mxu1 %v5748_v11 }
 0x46e   :  { %4134 = vmatprep.subr.bf16.mxu1 %v5753_v12  ;;  %v2730_v12 = vsub.s32 6, %v6603_v50 }
 0x471   :  { %4135 = vmatpush1.bf16.msra.mxu1 %v5751_v15  ;;  %v2731_v15 = vrot.slane %v7540_v18, %v2730_v12 }
 0x472   :  { %4136 = vmatprep.subr.bf16.mxu1 %v5756_v16 }
 0x475   :  { %4137 = vmatpush1.bf16.msra.mxu1 %v5754_v17 }
 0x478   :  { %4139 = vmatmul.mubr.bf16.vlgmr.msra.gmra.mrb[16].mxu1 %v7143_v2 }
 0x4cb   :  { %v3968_v23 = vpop.f32.mrb[12].mxu1  ;;  %v4054_v24 = vpop.f32.mrb[8].mxu0 }
 0x4cc   :  { %v4936_v2 = vadd.f32 %v3968_v23, %v2707_v19  ;;  %v4940_v25 = vadd.f32 %v4054_v24, %v2715_v20  ;;  %v3970_v26 = vpop.f32.mrb[13].mxu1  ;;  %v4056_v27 = vpop.f32.mrb[9].mxu0 }
 0x4cd   :  { %v4937_v28 = vadd.f32 %v3970_v26, %v2711_v21  ;;  %v4941_v29 = vadd.f32 %v4056_v27, %v2719_v22  ;;  %v3972_v30 = vpop.f32.mrb[14].mxu1  ;;  %v4058_v31 = vpop.f32.mrb[10].mxu0 }
 0x4ce   :  { %v4866_v51 = vmul.f32 -1.442695, %v4936_v2  ;;  %v4868_v32 = vmul.f32 -1.442695, %v4940_v25  ;;  %v4938_v33 = vadd.f32 %v3972_v30, %v2707_v19  ;;  %v4942_v52 = vadd.f32 %v4058_v31, %v2715_v20  ;;  %v3974_v34 = vpop.f32.mrb[15].mxu1  ;;  %v4060_v35 = vpop.f32.mrb[11].mxu0 }
 0x4cf   :  { %v4867_v54 = vmul.f32 -1.442695, %v4937_v28  ;;  %v4869_v36 = vmul.f32 -1.442695, %v4941_v29  ;;  %v4939_v37 = vadd.f32 %v3974_v34, %v2711_v21  ;;  %v4943_v55 = vadd.f32 %v4060_v35, %v2719_v22 }
 0x4d0   :  { %5761 = vpow2.f32 %v4866_v51  ;;  %v4873_v38 = vmul.f32 -1.442695, %v4938_v33  ;;  %v4875_v39 = vmul.f32 -1.442695, %v4942_v52  ;;  %v2722_v33 = vsub.s32 4, %v6603_v50 }
 0x4d1   :  { %5763 = vpow2.f32 %v4868_v32  ;;  %v4874_v40 = vmul.f32 -1.442695, %v4939_v37  ;;  %v4876_v41 = vmul.f32 -1.442695, %v4943_v55  ;;  %v2726_v52 = vsub.s32 5, %v6603_v50 }
 0x4d2   :  { %5765 = vpow2.f32 %v4867_v54  ;;  %v2723_v34 = vrot.slane %v7540_v18, %v2722_v33 }
 0x4d3   :  { %5767 = vpow2.f32 %v4869_v36  ;;  %v2727_v35 = vrot.slane %v7540_v18, %v2726_v52 }
 0x4d4   :  { %5769 = vpow2.f32 %v4873_v38 }
 0x4d5   :  { %5771 = vpow2.f32 %v4875_v39 }
 0x4d6   :  { %5773 = vpow2.f32 %v4874_v40 }
 0x4d7   :  { %5775 = vpow2.f32 %v4876_v41 }
 0x4da   :  { %v5762_v42 = vpop.eup %5761 }
 0x4db   :  { %v5764_v43 = vpop.eup %5763  ;;  %v4273_v44 = vadd.f32 1.0, %v5762_v42 }
 0x4dc   :  { %v5766_v45 = vpop.eup %5765  ;;  %v4275_v46 = vadd.f32 1.0, %v5764_v43 }
 0x4dd   :  { %v5768_v14 = vpop.eup %5767  ;;  %5777 = vrcp.f32 %v4273_v44  ;;  %v4274_v47 = vadd.f32 1.0, %v5766_v45 }
 0x4de   :  { %v5770_v48 = vpop.eup %5769  ;;  %5779 = vrcp.f32 %v4275_v46  ;;  %v4276_v13 = vadd.f32 1.0, %v5768_v14 }
 0x4df   :  { %v5772_v3 = vpop.eup %5771  ;;  %5781 = vrcp.f32 %v4274_v47  ;;  %v4280_v49 = vadd.f32 1.0, %v5770_v48 }
 0x4e0   :  { %v5774_v53 = vpop.eup %5773  ;;  %5783 = vrcp.f32 %v4276_v13  ;;  %v4282_v56 = vadd.f32 1.0, %v5772_v3 }
 0x4e1   :  { %v5776_v57 = vpop.eup %5775  ;;  %5785 = vrcp.f32 %v4280_v49  ;;  %v4281_v58 = vadd.f32 1.0, %v5774_v53 }
 0x4e2   :  { %5787 = vrcp.f32 %v4282_v56  ;;  %v4283_v59 = vadd.f32 1.0, %v5776_v57 }
 0x4e3   :  { %5789 = vrcp.f32 %v4281_v58 }
 0x4e4   :  { %5791 = vrcp.f32 %v4283_v59 }
 0x4e7   :  { %v5778_v60 = vpop.eup %5777 }
 0x4e8   :  { %v5780_v61 = vpop.eup %5779  ;;  %4315 = vst [vmem:[%s7611_s10] sm:$0xff] %v5778_v60 }
 0x4e9   :  { %v5782_v62 = vpop.eup %5781  ;;  %4317 = vst [vmem:[%s7611_s10 + $0x10] sm:$0xff] %v5780_v61 }
 0x4ea   :  { %v5784_v63 = vpop.eup %5783  ;;  %4316 = vst [vmem:[%s7611_s10 + $0x8] sm:$0xff] %v5782_v62 }
 0x4eb   :  { %v5786_v0 = vpop.eup %5785  ;;  %4318 = vst [vmem:[%s7611_s10 + $0x18] sm:$0xff] %v5784_v63 }
 0x4ec   :  { %v5788_v1 = vpop.eup %5787  ;;  %4322 = vst [vmem:[%s7611_s10 + $0x38] sm:$0xff] %v5786_v0  ;;  %v4896_v4 = vpop.f32.mrb[12].mxu0 }
 0x4ed   :  { %v5790_v5 = vpop.eup %5789  ;;  %4324 = vst [vmem:[%s7611_s10 + $0x48] sm:$0xff] %v5788_v1  ;;  %v4897_v6 = vpop.f32.mrb[13].mxu0 }
 0x4ee   :  { %v5792_v7 = vpop.eup %5791  ;;  %4323 = vst [vmem:[%s7611_s10 + $0x40] sm:$0xff] %v5790_v5  ;;  %v4898_v8 = vadd.f32 %v4897_v6, %v4896_v4  ;;  %v4899_v9 = vpop.f32.mrb[14].mxu0 }
 0x4ef   :  { %4325 = vst [vmem:[%s7611_s10 + $0x50] sm:$0xff] %v5792_v7  ;;  %v4900_v10 = vpop.f32.mrb[15].mxu0 }
 0x4f0   :  { %v4901_v11 = vadd.f32 %v4900_v10, %v4899_v9  ;;  %v4184_v19 = vadd.f32 %v4898_v8, %v2731_v15 }
 0x4f2   :  { %v4187_v23 = vadd.f32 %v4901_v11, %v2731_v15 }
 0x50c   :  { %v4918_v16 = vpop.f32.mrb[16].mxu0 }
 0x50d   :  { %v4919_v17 = vpop.f32.mrb[17].mxu0 }
 0x50e   :  { %v4920_v20 = vadd.f32 %v4919_v17, %v4918_v16  ;;  %v4921_v21 = vpop.f32.mrb[18].mxu0 }
 0x50f   :  { %v4922_v22 = vpop.f32.mrb[19].mxu0 }
 0x510   :  { %v4225_v24 = vadd.f32 %v4920_v20, %v4184_v19  ;;  %v4923_v2 = vadd.f32 %v4922_v22, %v4921_v21 }
 0x512   :  { %v4872_v25 = vmul.f32 -1.442695, %v4225_v24  ;;  %v4228_v26 = vadd.f32 %v4923_v2, %v4187_v23 }
 0x514   :  { %5793 = vpow2.f32 %v4872_v25  ;;  %v4879_v27 = vmul.f32 -1.442695, %v4228_v26 }
 0x516   :  { %5795 = vpow2.f32 %v4879_v27 }
 0x51e   :  { %v5794_v28 = vpop.eup %5793 }
 0x51f   :  { %v4279_v29 = vadd.f32 1.0, %v5794_v28 }
 0x520   :  { %v5796_v30 = vpop.eup %5795 }
 0x521   :  { %5797 = vrcp.f32 %v4279_v29  ;;  %v4286_v31 = vadd.f32 1.0, %v5796_v30 }
 0x523   :  { %5799 = vrcp.f32 %v4286_v31 }
 0x52b   :  { %v5798_v51 = vpop.eup %5797 }
 0x52c   :  { %4321 = vst.msk [vmem:[%s7611_s10 + $0x30] sm:$0xff] %vm1279_vm0, %v5798_v51 }
 0x52d   :  { %v5800_v32 = vpop.eup %5799 }
 0x52e   :  { %4328 = vst.msk [vmem:[%s7611_s10 + $0x68] sm:$0xff] %vm1279_vm0, %v5800_v32 }
 0x54b   :  { %v4140_v54 = vpop.f32.mrb[16].mxu1 }
 0x54c   :  { %v4944_v36 = vadd.f32 %v4140_v54, %v2723_v34  ;;  %v4142_v37 = vpop.f32.mrb[17].mxu1 }
 0x54d   :  { %v4945_v55 = vadd.f32 %v4142_v37, %v2727_v35  ;;  %v4144_v38 = vpop.f32.mrb[18].mxu1 }
 0x54e   :  { %v4870_v39 = vmul.f32 -1.442695, %v4944_v36  ;;  %v4946_v40 = vadd.f32 %v4144_v38, %v2723_v34  ;;  %v4146_v41 = vpop.f32.mrb[19].mxu1 }
 0x54f   :  { %v4871_v42 = vmul.f32 -1.442695, %v4945_v55  ;;  %v4947_v43 = vadd.f32 %v4146_v41, %v2727_v35 }
 0x550   :  { %5801 = vpow2.f32 %v4870_v39  ;;  %v4877_v44 = vmul.f32 -1.442695, %v4946_v40 }
 0x551   :  { %5803 = vpow2.f32 %v4871_v42  ;;  %v4878_v45 = vmul.f32 -1.442695, %v4947_v43 }
 0x552   :  { %5805 = vpow2.f32 %v4877_v44 }
 0x553   :  { %5807 = vpow2.f32 %v4878_v45 }
 0x55a   :  { %v5802_v50 = vpop.eup %5801 }
 0x55b   :  { %v5804_v46 = vpop.eup %5803  ;;  %v4277_v14 = vadd.f32 1.0, %v5802_v50 }
 0x55c   :  { %v5806_v18 = vpop.eup %5805  ;;  %v4278_v47 = vadd.f32 1.0, %v5804_v46 }
 0x55d   :  { %v5808_v48 = vpop.eup %5807  ;;  %5809 = vrcp.f32 %v4277_v14  ;;  %v4284_v13 = vadd.f32 1.0, %v5806_v18 }
 0x55e   :  { %5811 = vrcp.f32 %v4278_v47  ;;  %v4285_v3 = vadd.f32 1.0, %v5808_v48 }
 0x55f   :  { %5813 = vrcp.f32 %v4284_v13 }
 0x560   :  { %5815 = vrcp.f32 %v4285_v3 }
 0x567   :  { %v5810_v49 = vpop.eup %5809 }
 0x568   :  { %v5812_v53 = vpop.eup %5811  ;;  %4319 = vst [vmem:[%s7611_s10 + $0x20] sm:$0xff] %v5810_v49 }
 0x569   :  { %v5814_v56 = vpop.eup %5813  ;;  %4320 = vst [vmem:[%s7611_s10 + $0x28] sm:$0xff] %v5812_v53 }
 0x56a   :  { %v5816_v57 = vpop.eup %5815  ;;  %4326 = vst [vmem:[%s7611_s10 + $0x58] sm:$0xff] %v5814_v56 }
 0x56b   :  { %4327 = vst [vmem:[%s7611_s10 + $0x60] sm:$0xff] %v5816_v57 }

</bundles_post_ra>
